<compile_context>
chip_gen: v5e
topology: v5e:2x2
jax: 0.10.0
libtpu: 0.0.40
codegen_flags: <defaults>
</compile_context>

<pallas_src>
import functools
import math

import jax
import jax.numpy as jnp
from jax.experimental import pallas as pl
from jax.experimental.pallas import tpu as pltpu

SCALE_WEIGHT = 0.5 ** 0.5


def _stacked_cnn_kernel(x_ref, w_ref, b_ref, o_ref, *, H):
    # x_ref: (C, TM)      f32 input block (TM = tile_n * H, multiple of 128)
    # w_ref: (L, 2C, 3C)  bf16 fused out|gate weights, taps stacked along 3C
    # b_ref: (L, 2C, 1)   f32 fused biases
    # o_ref: (C, TM)      output block
    C, TM = o_ref.shape
    L = w_ref.shape[0]

    # Layer-invariant boundary masks over the lane (M) axis; h = m % H.
    col = jax.lax.broadcasted_iota(jnp.int32, (1, TM), 1)
    h = col % H
    first = h == 0          # tap h-1 must see the conv's zero padding here
    last = h == H - 1       # tap h+1 must see the conv's zero padding here

    x0 = x_ref[...].astype(jnp.float32)

    def layer(l, x):
        # Shifted taps along the lane axis; masks keep taps from leaking across
        # the stacked (b, w) columns or past the conv's zero padding.
        xp = jnp.where(first, 0.0, jnp.roll(x, 1, axis=1))    # x[:, h-1]
        xn = jnp.where(last, 0.0, jnp.roll(x, -1, axis=1))    # x[:, h+1]
        xcat = jnp.concatenate([xp, x, xn], axis=0).astype(jnp.bfloat16)  # (3C, TM)

        # Single fused MXU push: (2C, 3C) @ (3C, TM) -> (2C, TM), f32 accumulate.
        y = jnp.dot(w_ref[l], xcat, preferred_element_type=jnp.float32)
        y = y + b_ref[l]                                       # (2C, 1) broadcast

        out, gate = y[:C], y[C:]
        # TODO(synk): nn.Dropout runs in eval mode (identity); training-mode
        # stochastic masking is not reproduced.
        return (x + out * jax.nn.sigmoid(gate)) * SCALE_WEIGHT

    x = jax.lax.fori_loop(0, L, layer, x0, unroll=(L <= 8))
    o_ref[...] = x.astype(o_ref.dtype)


def stacked_cnn_pallas(x_nchw, w_packed, b_packed, *, tile_n=256):
    """x_nchw: [B, C, H, W]. w_packed: [L, 2C, 3C] bf16. b_packed: [L, 2C, 1] f32."""
    B, C, H, W = x_nchw.shape
    L = w_packed.shape[0]
    N = B * W

    # Channel-major, H fastest within each (b, w) column: (C, N*H).
    x_cm = jnp.transpose(x_nchw, (1, 0, 3, 2)).reshape(C, N * H)

    # tile_n must be a multiple of `unit` so tile_m = tile_n * H is a multiple of
    # 128 (lane-dense blocks); also aim for >=2 tiles (megacore) when N allows.
    unit = 128 // math.gcd(H, 128)
    tn = min(int(tile_n), max(1, pl.cdiv(N, 2)))
    tn = max(unit, (tn // unit) * unit)
    n_tiles = pl.cdiv(N, tn)
    n_pad = n_tiles * tn
    if n_pad != N:
        x_cm = jnp.pad(x_cm, ((0, 0), (0, (n_pad - N) * H)))
    tm = tn * H
    m_pad = n_pad * H

    # VMEM budget: resident weights/bias + double-buffered in/out blocks + temps.
    need = (w_packed.size * 2 + b_packed.size * 4
            + 4 * C * tm * 4            # x / o double buffers
            + 8 * C * tm * 4)           # in-kernel temporaries (xcat, y, ...)
    vmem_limit = int(min(64 * 1024 * 1024, max(32 * 1024 * 1024, need + (2 << 20))))

    out = pl.pallas_call(
        functools.partial(_stacked_cnn_kernel, H=H),
        out_shape=jax.ShapeDtypeStruct((C, m_pad), x_nchw.dtype),
        grid=(n_tiles,),
        in_specs=[
            pl.BlockSpec((C, tm), lambda n: (0, n)),
            pl.BlockSpec((L, 2 * C, 3 * C), lambda n: (0, 0, 0)),   # resident stack
            pl.BlockSpec((L, 2 * C, 1), lambda n: (0, 0, 0)),       # resident bias
        ],
        out_specs=pl.BlockSpec((C, tm), lambda n: (0, n)),
        compiler_params=pltpu.CompilerParams(
            dimension_semantics=("parallel",),
            vmem_limit_bytes=vmem_limit),
    )(x_cm, w_packed, b_packed)

    out = out[:, :N * H]
    return jnp.transpose(out.reshape(C, B, W, H), (1, 0, 3, 2))


def make_params(key, num_layers, input_size, width=3, dropout=0.2):
    """Deterministic xavier_uniform init matching GatedConv.__init__ shapes."""
    C = input_size
    gain = (4.0 * (1.0 - dropout)) ** 0.5
    fan_in = C * width * 1
    fan_out = 2 * C * width * 1
    bound_w = gain * math.sqrt(6.0 / (fan_in + fan_out))
    bound_b = 1.0 / math.sqrt(fan_in)
    weights, biases = [], []
    for _ in range(num_layers):
        key, kw, kb = jax.random.split(key, 3)
        w = jax.random.uniform(kw, (2 * C, C, width, 1), jnp.float32,
                               -bound_w, bound_w)     # torch Conv2d weight layout OIHW
        b = jax.random.uniform(kb, (2 * C,), jnp.float32, -bound_b, bound_b)
        weights.append(w)
        biases.append(b)
    return weights, biases


def pack_params(weights, biases):
    """Repack torch-layout conv params into the fused channel-major kernel layout.

    Returns:
      w_packed: [L, 2C, 3C] bf16  (rows = out|gate fused, cols = tap k * C + c_in)
      b_packed: [L, 2C, 1]  f32
    """
    w_list, b_list = [], []
    for w, b in zip(weights, biases):
        w_ohk = w[..., 0]                                   # [2C, C, 3]
        wcat = jnp.concatenate([w_ohk[:, :, k] for k in range(w_ohk.shape[-1])],
                               axis=1)                      # [2C, 3C]
        w_list.append(wcat)
        b_list.append(b[:, None])                           # [2C, 1]
    w_packed = jnp.stack(w_list).astype(jnp.bfloat16)       # cast once on the host
    b_packed = jnp.stack(b_list).astype(jnp.float32)
    return w_packed, b_packed


def ref_forward(x, weights, biases):
    """Pure-JAX NCHW reference mirroring the PyTorch forward (eval mode), f32."""
    C = x.shape[1]
    for w, b in zip(weights, biases):
        y = jax.lax.conv_general_dilated(
            x, w, window_strides=(1, 1), padding=((1, 1), (0, 0)),
            dimension_numbers=("NCHW", "OIHW", "NCHW"))
        y = y + b[None, :, None, None]
        out, gate = y[:, :C], y[:, C:]
        x = (x + out * jax.nn.sigmoid(gate)) * SCALE_WEIGHT
    return x


if __name__ == "__main__":
    num_layers = 3
    B, C, H, W = 8, 32, 16, 4          # NCHW: batch=8, hidden=32, seq=16, width=4

    key = jax.random.PRNGKey(0)
    key, kx = jax.random.split(key)
    x = jax.random.normal(kx, (B, C, H, W), jnp.float32)

    weights, biases = make_params(key, num_layers, C)
    w_packed, b_packed = pack_params(weights, biases)

    y_kernel = jax.block_until_ready(stacked_cnn_pallas(x, w_packed, b_packed))
    y_ref = jax.block_until_ready(ref_forward(x, weights, biases))

    assert y_kernel.shape == x.shape and y_kernel.dtype == x.dtype
    # bf16 MXU operands -> relaxed tolerance vs the f32 reference (compounds with L).
    err = float(jnp.max(jnp.abs(y_kernel - y_ref)))
    assert jnp.allclose(y_kernel, y_ref, atol=5e-2, rtol=5e-2), err
    print("KERNEL_OK")
</pallas_src>

<mosaic_0001>
module attributes {stable_mosaic.version = 11 : i64} {
  func.func @_stacked_cnn_kernel(%arg0: i32, %arg1: memref<32x256xf32, #tpu.memory_space<vmem>>, %arg2: memref<3x64x96xbf16, #tpu.memory_space<vmem>>, %arg3: memref<3x64x1xf32, #tpu.memory_space<vmem>>, %arg4: memref<32x256xf32, #tpu.memory_space<vmem>>) attributes {dimension_semantics = [#tpu.dimension_semantics<parallel>], iteration_bounds = array<i64: 2>, scalar_prefetch = 0 : i64, scratch_operands = 0 : i64, tpu.core_type = #tpu.core_type<tc>, window_params = [{transform_indices = @transform_0, window_bounds = array<i64: 32, 256>}, {pipeline_mode = #tpu.pipeline_mode<synchronous>, transform_indices = @transform_1, window_bounds = array<i64: 3, 64, 96>}, {pipeline_mode = #tpu.pipeline_mode<synchronous>, transform_indices = @transform_2, window_bounds = array<i64: 3, 64, 1>}, {transform_indices = @transform_3, window_bounds = array<i64: 32, 256>}]} {
    %0 = tpu.iota {dimensions = array<i32: 1>} : vector<1x256xi32>
    %c16_i32 = arith.constant 16 : i32
    %c0_i32 = arith.constant 0 : i32
    %1 = arith.cmpi eq, %c16_i32, %c0_i32 : i32
    %c1_i32 = arith.constant 1 : i32
    %2 = arith.select %1, %c1_i32, %c16_i32 : i32
    %3 = vector.broadcast %2 : i32 to vector<1x256xi32>
    %4 = arith.remsi %0, %3 : vector<1x256xi32>
    %c0_i32_0 = arith.constant 0 : i32
    %5 = vector.broadcast %c0_i32_0 : i32 to vector<1x256xi32>
    %6 = arith.cmpi ne, %4, %5 : vector<1x256xi32>
    %c0_i32_1 = arith.constant 0 : i32
    %7 = vector.broadcast %c0_i32_1 : i32 to vector<1x256xi32>
    %8 = arith.cmpi slt, %4, %7 : vector<1x256xi32>
    %c0_i32_2 = arith.constant 0 : i32
    %9 = arith.cmpi slt, %2, %c0_i32_2 : i32
    %10 = vector.broadcast %9 : i1 to vector<1x256xi1>
    %11 = vector.broadcast %10 : vector<1x256xi1> to vector<1x256xi1>
    %12 = arith.xori %8, %11 : vector<1x256xi1>
    %13 = arith.andi %12, %6 : vector<1x256xi1>
    %14 = vector.broadcast %2 : i32 to vector<1x256xi32>
    %15 = arith.addi %4, %14 : vector<1x256xi32>
    %16 = arith.select %13, %15, %4 : vector<1x256xi1>, vector<1x256xi32>
    %c0_i32_3 = arith.constant 0 : i32
    %17 = vector.broadcast %c0_i32_3 : i32 to vector<1x256xi32>
    %18 = arith.cmpi eq, %16, %17 : vector<1x256xi32>
    %c15_i32 = arith.constant 15 : i32
    %19 = vector.broadcast %c15_i32 : i32 to vector<1x256xi32>
    %20 = arith.cmpi eq, %16, %19 : vector<1x256xi32>
    %c0 = arith.constant 0 : index
    %c0_4 = arith.constant 0 : index
    %21 = vector.load %arg1[%c0, %c0_4] : memref<32x256xf32, #tpu.memory_space<vmem>>, vector<32x256xf32>
    %c0_i32_5 = arith.constant 0 : i32
    %22 = vector.extract_strided_slice %21 {offsets = [0, 255], sizes = [32, 1], strides = [1, 1]} : vector<32x256xf32> to vector<32x1xf32>
    %23 = vector.extract_strided_slice %21 {offsets = [0, 0], sizes = [32, 255], strides = [1, 1]} : vector<32x256xf32> to vector<32x255xf32>
    %24 = tpu.concatenate %22, %23 in 1 : vector<32x1xf32>, vector<32x255xf32> -> vector<32x256xf32>
    %cst = arith.constant 0.000000e+00 : f32
    %25 = vector.shape_cast %18 : vector<1x256xi1> to vector<1x256xi1>
    %26 = vector.broadcast %25 : vector<1x256xi1> to vector<32x256xi1>
    %27 = vector.broadcast %cst : f32 to vector<32x256xf32>
    %28 = arith.select %26, %27, %24 : vector<32x256xi1>, vector<32x256xf32>
    %29 = vector.extract_strided_slice %21 {offsets = [0, 1], sizes = [32, 255], strides = [1, 1]} : vector<32x256xf32> to vector<32x255xf32>
    %30 = vector.extract_strided_slice %21 {offsets = [0, 0], sizes = [32, 1], strides = [1, 1]} : vector<32x256xf32> to vector<32x1xf32>
    %31 = tpu.concatenate %29, %30 in 1 : vector<32x255xf32>, vector<32x1xf32> -> vector<32x256xf32>
    %cst_6 = arith.constant 0.000000e+00 : f32
    %32 = vector.shape_cast %20 : vector<1x256xi1> to vector<1x256xi1>
    %33 = vector.broadcast %32 : vector<1x256xi1> to vector<32x256xi1>
    %34 = vector.broadcast %cst_6 : f32 to vector<32x256xf32>
    %35 = arith.select %33, %34, %31 : vector<32x256xi1>, vector<32x256xf32>
    %36 = tpu.concatenate %28, %21, %35 in 0 : vector<32x256xf32>, vector<32x256xf32>, vector<32x256xf32> -> vector<96x256xf32>
    %37 = arith.truncf %36 : vector<96x256xf32> to vector<96x256xbf16>
    %38 = arith.index_cast %c0_i32_5 : i32 to index
    %c0_7 = arith.constant 0 : index
    %c0_8 = arith.constant 0 : index
    %39 = vector.load %arg2[%38, %c0_7, %c0_8] : memref<3x64x96xbf16, #tpu.memory_space<vmem>>, vector<1x64x96xbf16>
    %40 = vector.shape_cast %39 : vector<1x64x96xbf16> to vector<64x96xbf16>
    %cst_9 = arith.constant dense<0.000000e+00> : vector<64x256xf32>
    %41 = tpu.matmul %40, %37, %cst_9 {dimension_numbers = #tpu.dot_dimension_numbers<[1], [0], [0], [1], [0, 0, 1, 1], [], []>} : vector<64x96xbf16>, vector<96x256xbf16>, vector<64x256xf32> -> vector<64x256xf32>
    %42 = arith.index_cast %c0_i32_5 : i32 to index
    %c0_10 = arith.constant 0 : index
    %c0_11 = arith.constant 0 : index
    %43 = vector.load %arg3[%42, %c0_10, %c0_11] : memref<3x64x1xf32, #tpu.memory_space<vmem>>, vector<1x64x1xf32>
    %44 = vector.shape_cast %43 : vector<1x64x1xf32> to vector<64x1xf32>
    %45 = vector.broadcast %44 : vector<64x1xf32> to vector<64x256xf32>
    %46 = arith.addf %41, %45 : vector<64x256xf32>
    %47 = vector.extract_strided_slice %46 {offsets = [0, 0], sizes = [32, 256], strides = [1, 1]} : vector<64x256xf32> to vector<32x256xf32>
    %48 = vector.extract_strided_slice %46 {offsets = [32, 0], sizes = [32, 256], strides = [1, 1]} : vector<64x256xf32> to vector<32x256xf32>
    %49 = arith.negf %48 : vector<32x256xf32>
    %50 = math.exp %49 : vector<32x256xf32>
    %cst_12 = arith.constant 1.000000e+00 : f32
    %51 = vector.broadcast %cst_12 : f32 to vector<32x256xf32>
    %52 = arith.addf %51, %50 : vector<32x256xf32>
    %53 = arith.divf %51, %52 : vector<32x256xf32>
    %54 = arith.mulf %47, %53 : vector<32x256xf32>
    %55 = arith.addf %21, %54 : vector<32x256xf32>
    %cst_13 = arith.constant 0.707106769 : f32
    %56 = vector.broadcast %cst_13 : f32 to vector<32x256xf32>
    %57 = arith.mulf %55, %56 : vector<32x256xf32>
    %c1_i32_14 = arith.constant 1 : i32
    %58 = vector.extract_strided_slice %57 {offsets = [0, 255], sizes = [32, 1], strides = [1, 1]} : vector<32x256xf32> to vector<32x1xf32>
    %59 = vector.extract_strided_slice %57 {offsets = [0, 0], sizes = [32, 255], strides = [1, 1]} : vector<32x256xf32> to vector<32x255xf32>
    %60 = tpu.concatenate %58, %59 in 1 : vector<32x1xf32>, vector<32x255xf32> -> vector<32x256xf32>
    %cst_15 = arith.constant 0.000000e+00 : f32
    %61 = vector.shape_cast %18 : vector<1x256xi1> to vector<1x256xi1>
    %62 = vector.broadcast %61 : vector<1x256xi1> to vector<32x256xi1>
    %63 = vector.broadcast %cst_15 : f32 to vector<32x256xf32>
    %64 = arith.select %62, %63, %60 : vector<32x256xi1>, vector<32x256xf32>
    %65 = vector.extract_strided_slice %57 {offsets = [0, 1], sizes = [32, 255], strides = [1, 1]} : vector<32x256xf32> to vector<32x255xf32>
    %66 = vector.extract_strided_slice %57 {offsets = [0, 0], sizes = [32, 1], strides = [1, 1]} : vector<32x256xf32> to vector<32x1xf32>
    %67 = tpu.concatenate %65, %66 in 1 : vector<32x255xf32>, vector<32x1xf32> -> vector<32x256xf32>
    %cst_16 = arith.constant 0.000000e+00 : f32
    %68 = vector.shape_cast %20 : vector<1x256xi1> to vector<1x256xi1>
    %69 = vector.broadcast %68 : vector<1x256xi1> to vector<32x256xi1>
    %70 = vector.broadcast %cst_16 : f32 to vector<32x256xf32>
    %71 = arith.select %69, %70, %67 : vector<32x256xi1>, vector<32x256xf32>
    %72 = tpu.concatenate %64, %57, %71 in 0 : vector<32x256xf32>, vector<32x256xf32>, vector<32x256xf32> -> vector<96x256xf32>
    %73 = arith.truncf %72 : vector<96x256xf32> to vector<96x256xbf16>
    %74 = arith.index_cast %c1_i32_14 : i32 to index
    %c0_17 = arith.constant 0 : index
    %c0_18 = arith.constant 0 : index
    %75 = vector.load %arg2[%74, %c0_17, %c0_18] : memref<3x64x96xbf16, #tpu.memory_space<vmem>>, vector<1x64x96xbf16>
    %76 = vector.shape_cast %75 : vector<1x64x96xbf16> to vector<64x96xbf16>
    %cst_19 = arith.constant dense<0.000000e+00> : vector<64x256xf32>
    %77 = tpu.matmul %76, %73, %cst_19 {dimension_numbers = #tpu.dot_dimension_numbers<[1], [0], [0], [1], [0, 0, 1, 1], [], []>} : vector<64x96xbf16>, vector<96x256xbf16>, vector<64x256xf32> -> vector<64x256xf32>
    %78 = arith.index_cast %c1_i32_14 : i32 to index
    %c0_20 = arith.constant 0 : index
    %c0_21 = arith.constant 0 : index
    %79 = vector.load %arg3[%78, %c0_20, %c0_21] : memref<3x64x1xf32, #tpu.memory_space<vmem>>, vector<1x64x1xf32>
    %80 = vector.shape_cast %79 : vector<1x64x1xf32> to vector<64x1xf32>
    %81 = vector.broadcast %80 : vector<64x1xf32> to vector<64x256xf32>
    %82 = arith.addf %77, %81 : vector<64x256xf32>
    %83 = vector.extract_strided_slice %82 {offsets = [0, 0], sizes = [32, 256], strides = [1, 1]} : vector<64x256xf32> to vector<32x256xf32>
    %84 = vector.extract_strided_slice %82 {offsets = [32, 0], sizes = [32, 256], strides = [1, 1]} : vector<64x256xf32> to vector<32x256xf32>
    %85 = arith.negf %84 : vector<32x256xf32>
    %86 = math.exp %85 : vector<32x256xf32>
    %cst_22 = arith.constant 1.000000e+00 : f32
    %87 = vector.broadcast %cst_22 : f32 to vector<32x256xf32>
    %88 = arith.addf %87, %86 : vector<32x256xf32>
    %89 = arith.divf %87, %88 : vector<32x256xf32>
    %90 = arith.mulf %83, %89 : vector<32x256xf32>
    %91 = arith.addf %57, %90 : vector<32x256xf32>
    %cst_23 = arith.constant 0.707106769 : f32
    %92 = vector.broadcast %cst_23 : f32 to vector<32x256xf32>
    %93 = arith.mulf %91, %92 : vector<32x256xf32>
    %c2_i32 = arith.constant 2 : i32
    %94 = vector.extract_strided_slice %93 {offsets = [0, 255], sizes = [32, 1], strides = [1, 1]} : vector<32x256xf32> to vector<32x1xf32>
    %95 = vector.extract_strided_slice %93 {offsets = [0, 0], sizes = [32, 255], strides = [1, 1]} : vector<32x256xf32> to vector<32x255xf32>
    %96 = tpu.concatenate %94, %95 in 1 : vector<32x1xf32>, vector<32x255xf32> -> vector<32x256xf32>
    %cst_24 = arith.constant 0.000000e+00 : f32
    %97 = vector.shape_cast %18 : vector<1x256xi1> to vector<1x256xi1>
    %98 = vector.broadcast %97 : vector<1x256xi1> to vector<32x256xi1>
    %99 = vector.broadcast %cst_24 : f32 to vector<32x256xf32>
    %100 = arith.select %98, %99, %96 : vector<32x256xi1>, vector<32x256xf32>
    %101 = vector.extract_strided_slice %93 {offsets = [0, 1], sizes = [32, 255], strides = [1, 1]} : vector<32x256xf32> to vector<32x255xf32>
    %102 = vector.extract_strided_slice %93 {offsets = [0, 0], sizes = [32, 1], strides = [1, 1]} : vector<32x256xf32> to vector<32x1xf32>
    %103 = tpu.concatenate %101, %102 in 1 : vector<32x255xf32>, vector<32x1xf32> -> vector<32x256xf32>
    %cst_25 = arith.constant 0.000000e+00 : f32
    %104 = vector.shape_cast %20 : vector<1x256xi1> to vector<1x256xi1>
    %105 = vector.broadcast %104 : vector<1x256xi1> to vector<32x256xi1>
    %106 = vector.broadcast %cst_25 : f32 to vector<32x256xf32>
    %107 = arith.select %105, %106, %103 : vector<32x256xi1>, vector<32x256xf32>
    %108 = tpu.concatenate %100, %93, %107 in 0 : vector<32x256xf32>, vector<32x256xf32>, vector<32x256xf32> -> vector<96x256xf32>
    %109 = arith.truncf %108 : vector<96x256xf32> to vector<96x256xbf16>
    %110 = arith.index_cast %c2_i32 : i32 to index
    %c0_26 = arith.constant 0 : index
    %c0_27 = arith.constant 0 : index
    %111 = vector.load %arg2[%110, %c0_26, %c0_27] : memref<3x64x96xbf16, #tpu.memory_space<vmem>>, vector<1x64x96xbf16>
    %112 = vector.shape_cast %111 : vector<1x64x96xbf16> to vector<64x96xbf16>
    %cst_28 = arith.constant dense<0.000000e+00> : vector<64x256xf32>
    %113 = tpu.matmul %112, %109, %cst_28 {dimension_numbers = #tpu.dot_dimension_numbers<[1], [0], [0], [1], [0, 0, 1, 1], [], []>} : vector<64x96xbf16>, vector<96x256xbf16>, vector<64x256xf32> -> vector<64x256xf32>
    %114 = arith.index_cast %c2_i32 : i32 to index
    %c0_29 = arith.constant 0 : index
    %c0_30 = arith.constant 0 : index
    %115 = vector.load %arg3[%114, %c0_29, %c0_30] : memref<3x64x1xf32, #tpu.memory_space<vmem>>, vector<1x64x1xf32>
    %116 = vector.shape_cast %115 : vector<1x64x1xf32> to vector<64x1xf32>
    %117 = vector.broadcast %116 : vector<64x1xf32> to vector<64x256xf32>
    %118 = arith.addf %113, %117 : vector<64x256xf32>
    %119 = vector.extract_strided_slice %118 {offsets = [0, 0], sizes = [32, 256], strides = [1, 1]} : vector<64x256xf32> to vector<32x256xf32>
    %120 = vector.extract_strided_slice %118 {offsets = [32, 0], sizes = [32, 256], strides = [1, 1]} : vector<64x256xf32> to vector<32x256xf32>
    %121 = arith.negf %120 : vector<32x256xf32>
    %122 = math.exp %121 : vector<32x256xf32>
    %cst_31 = arith.constant 1.000000e+00 : f32
    %123 = vector.broadcast %cst_31 : f32 to vector<32x256xf32>
    %124 = arith.addf %123, %122 : vector<32x256xf32>
    %125 = arith.divf %123, %124 : vector<32x256xf32>
    %126 = arith.mulf %119, %125 : vector<32x256xf32>
    %127 = arith.addf %93, %126 : vector<32x256xf32>
    %cst_32 = arith.constant 0.707106769 : f32
    %128 = vector.broadcast %cst_32 : f32 to vector<32x256xf32>
    %129 = arith.mulf %127, %128 : vector<32x256xf32>
    %c3_i32 = arith.constant 3 : i32
    %c0_33 = arith.constant 0 : index
    %c0_34 = arith.constant 0 : index
    %130 = vector.load %arg4[%c0_33, %c0_34] : memref<32x256xf32, #tpu.memory_space<vmem>>, vector<32x256xf32>
    tpu.vector_store %arg4[%c0_33, %c0_34], %129 {strides = array<i32>} : memref<32x256xf32, #tpu.memory_space<vmem>>, vector<32x256xf32>,
    return
  }
  func.func @transform_0(%arg0: i32) -> (i32, i32) {
    %c0_i32 = arith.constant 0 : i32
    %c0_i32_0 = arith.constant 0 : i32
    return %c0_i32, %arg0 : i32, i32
  }
  func.func @transform_1(%arg0: i32) -> (i32, i32, i32) {
    %c0_i32 = arith.constant 0 : i32
    %c0_i32_0 = arith.constant 0 : i32
    %c0_i32_1 = arith.constant 0 : i32
    %c0_i32_2 = arith.constant 0 : i32
    return %c0_i32, %c0_i32_0, %c0_i32_1 : i32, i32, i32
  }
  func.func @transform_2(%arg0: i32) -> (i32, i32, i32) {
    %c0_i32 = arith.constant 0 : i32
    %c0_i32_0 = arith.constant 0 : i32
    %c0_i32_1 = arith.constant 0 : i32
    %c0_i32_2 = arith.constant 0 : i32
    return %c0_i32, %c0_i32_0, %c0_i32_1 : i32, i32, i32
  }
  func.func @transform_3(%arg0: i32) -> (i32, i32) {
    %c0_i32 = arith.constant 0 : i32
    %c0_i32_0 = arith.constant 0 : i32
    return %c0_i32, %arg0 : i32, i32
  }
}

</mosaic_0001>

<bundles_post_ra>
// kernel: tpu_custom_call.1
= control target key start
LH: loop header
LB: loop body
LE: loop exit
PB: predicated region body
PF: predicated region fallthrough
CT: control target
= control target key end

     0   :  { %8 = vsyncpa [#allocation4], 0  ;;  %s3216_s0 = inlined_call_operand.vmem [shape: f32[32,512], index: 0, kind: input, shape index: {}]   ;;  %s3217_s1 = inlined_call_operand.hbm [shape: bf16[3,64,96], index: 1, kind: input, shape index: {}]   ;;  %s3218_s2 = inlined_call_operand.vmem [shape: f32[3,64,1], index: 2, kind: input, shape index: {}]   ;;  %s3219_s3 = inlined_call_operand.hbm [shape: f32[32,512], index: 3, kind: output, shape index: {}]  }
   0x1   :  { %9 = vsyncpa [#allocation5], 0 }
   0x2   :  { %11 = vsyncpa [#allocation5 + $0x1], 0  ;;  %s2353_s12 = smov 0   ;;  %s2355_s13 = smov 0  }
   0x3   :  { %s2357_s14 = smov 0   ;;  %s2359_s15 = smov 0  }
   0x4 LB: > { %s2374_s16 = sadd.s32 4294967295, %s2322_s15   ;;  %s1671_s17 = sadd.s32 4294967294, %s2322_s15   ;;  %s2322_s15 = sphi %s2359_s15, %s3286_s15   ;;  %s2318_s14 = sphi %s2357_s14, %s3285_s14   ;;  %s2314_s13 = sphi %s2355_s13, %s3284_s13   ;;  %s2310_s12 = sphi %s2353_s12, %s3283_s12  }
   0x5   : > { %s2378_s18 = sadd.s32 1, %s2322_s15   ;;  %s24_s19 = sadd.s32 1, %s2318_s14 }
   0x6   : > { %s21_s20 = ssub.s32 %s2322_s15, %s2378_s18  ;;  %p31_p0 = scmp.ne.s32.totalorder %s2318_s14, %s2314_s13 }
   0x7   : > { %p22_p1 = scmp.eq.s32.totalorder %s21_s20, 0  ;;  %p32_p2 = scmp.eq.s32.totalorder %s2322_s15, 0 }
   0x8   : > { %p103_p3 = scmp.eq.s32.totalorder %s2374_s16, 1  ;;  %p108_p4 = scmp.ne.s32.totalorder %s2314_s13, %s2310_s12 }
   0x9   : > { %s2390_s21 = scalar_select %p22_p1, %s2318_s14, %s24_s19  }
   0xa   : > { %p2392_p5 = por %p32_p2, %p31_p0  ;;  %p2396_p6 = por %p103_p3, %p31_p0 }
   0xb   : > { %p109_p7 = scmp.eq.s32.totalorder %s1671_s17, 1  ;;  %p1672_p8 = scmp.ge.s32.totalorder %s2322_s15, 1 }
   0xc   : > { %p116_p9 = scmp.lt.s32.totalorder %s2322_s15, 3  ;;  %p1963_p11 = scmp.eq.s32.totalorder %s2374_s16, 0 }
   0xd   : > { %p2402_p10 = por %p109_p7, %p108_p4  ;;  %s127_s28 = sshll.u32 %s3217_s1, 4  ;;  %s128_s28 = int_to_ptr.hbm [resolvable:$true] %s127_s28 }
   0xe   : > { %p2407_p12 = pnand %p1672_p8, %p116_p9  ;;  %s2324_s29 = smov [#allocation3]  }
   0xf   : > { %s129_s30 = sshll.u32 %s2324_s29, 4  ;;  %s2325_s4 = smov 64   ;;  %s130_s30 = int_to_ptr.vmem [resolvable:$true] %s129_s30 }
  0x10   : > { %p1955_p13 = pneg %p2407_p12  ;;  %s2326_s5 = smov 4  }
  0x11   : > { %p1674_p1 = scmp.ge.s32.totalorder %s2322_s15, 2 }
  0x12   : > { %p1956_p0 = pnand %p1963_p11, %p1955_p13 }
  0x13   : > { %142 = sbr.rel (%p1674_p1) target bundleno = 36 (0x24), region = 24 }
  0x14   : > { %1958 = dma.hbm_to_vmem [thread:$0]  (!%p1956_p0), %s128_s28, 1536, %s130_s30, [#allocation4], %s2325_s4, %s2325_s4, %s2326_s5  }
  0x18   : > { %145 = sbr.rel (!%p2392_p5) target bundleno = 36 (0x24), region = 28  ;;  %s147_s6 = sand.u32 (%p2392_p5), 1, %s2318_s14  }
  0x19   : > { %s1919_s7 = sshll.u32 (%p2392_p5), %s2322_s15, 4  ;;  %s1675_s8 = sshll.u32 (%p2392_p5), %s147_s6, 6 }
  0x1a   : > { %s152_s11 = scalar_lea.vmem (%p2392_p5), %s3216_s0, %s1919_s7  ;;  %s149_s17 = scalar_lea.vmem (%p2392_p5), [#allocation2], %s1675_s8 }
  0x1b   : > { %v165_v0 = vld [vmem:[%s152_s11] sm:$0xff] (%p2392_p5)  ;;  %v167_v1 = vld [vmem:[%s152_s11 + $0x8] sm:$0xff] (%p2392_p5) }
  0x1c   : > { %v169_v2 = vld [vmem:[%s152_s11 + $0x20] sm:$0xff] (%p2392_p5)  ;;  %166 = vst [vmem:[%s149_s17] sm:$0xff] (%p2392_p5), %v165_v0  ;;  %v171_v3 = vld [vmem:[%s152_s11 + $0x28] sm:$0xff] (%p2392_p5) }
  0x1d   : > { %168 = vst [vmem:[%s149_s17 + $0x8] sm:$0xff] %v167_v1  ;;  %v173_v4 = vld [vmem:[%s152_s11 + $0x40] sm:$0xff]  ;;  %v175_v5 = vld [vmem:[%s152_s11 + $0x48] sm:$0xff] }
  0x1e   : > { %170 = vst [vmem:[%s149_s17 + $0x10] sm:$0xff] %v169_v2  ;;  %v177_v6 = vld [vmem:[%s152_s11 + $0x60] sm:$0xff]  ;;  %v179_v7 = vld [vmem:[%s152_s11 + $0x68] sm:$0xff] }
  0x1f   : > { %172 = vst [vmem:[%s149_s17 + $0x18] sm:$0xff] %v171_v3 }
  0x20   : > { %174 = vst [vmem:[%s149_s17 + $0x20] sm:$0xff] %v173_v4 }
  0x21   : > { %176 = vst [vmem:[%s149_s17 + $0x28] sm:$0xff] %v175_v5 }
  0x22   : > { %178 = vst [vmem:[%s149_s17 + $0x30] sm:$0xff] %v177_v6 }
  0x23   : > { %180 = vst [vmem:[%s149_s17 + $0x38] sm:$0xff] %v179_v7 }
  0x24 PF: > { %189 = sbr.rel (%p2407_p12) target bundleno = 1137 (0x471), region = 51  ;;  %s192_s19 = sand.u32 (!%p2407_p12), 1, %s2314_s13  }
  0x25   : > { %s2433_s20 = sshll.u32 (!%p2407_p12), %s192_s19, 6 }
  0x26   : > { %s194_s22 = scalar_lea.vmem (!%p2407_p12), [#allocation2], %s2433_s20 }
  0x29   : > { %2301 = dma.done.wait (%p1963_p11), [#allocation4], 1536  }
  0x2a   : > { %2303 = vsyncadd (%p1963_p11), [#allocation4], 4294965760  ;;  %v2440_v8 = vld [vmem:[%s194_s22 + $0x20] sm:$0xff]  ;;  %v2442_v9 = vld [vmem:[%s194_s22 + $0x28] sm:$0xff]  ;;  %s2327_s25 = smov 127   ;;  %s2328_s26 = smov 1   ;;  %v223_v24 = vlaneseq }
  0x2b   : > { %v2444_v10 = vld [vmem:[%s194_s22] sm:$0xff]  ;;  %v2007_v11 = vpack.i.bf16 %v2442_v9, %v2440_v8  ;;  %v2448_v12 = vld [vmem:[%s194_s22 + $0x8] sm:$0xff]  ;;  %v2450_v13 = vld [vmem:[%s194_s22 + $0x38] sm:$0xff]  ;;  %v2329_v33 = vmov 0   ;;  %vm3222_vm0 = vcmask 1039360   ;;  %vm3221_vm5 = vcmask 7168  }
  0x2c   : > { %v2017_v14 = vpack.i.bf16 %v2448_v12, %v2444_v10  ;;  %v2027_v15 = vpack.i.bf16 %v2450_v13, %v2442_v9  ;;  %v2458_v16 = vld [vmem:[%s194_s22 + $0x30] sm:$0xff]  ;;  %v2463_v18 = vld [vmem:[%s194_s22 + $0x18] sm:$0xff]  ;;  %v2480_v25 = vand.u32 127, %v223_v24  ;;  %2049 = vset.pattern.permute.xlu1 %v2329_v33  ;;  %2048 = vset.pattern.permute.xlu0 %v2329_v33  ;;  %v375_v59 = vpack.c.bf16 %v2450_v13, %v2442_v9  ;;  %v392_v4 = vld [vmem:[%s3218_s2 + $0x20] sm:$0xff]  ;;  %s3149_s4 = scalar_lea.vmem [#allocation6], %s2433_s20  ;;  %s1932_s20 = sshll.u32 %s2374_s16, 4 }
  0x2d   : > { %2008 = vrot.lane.b32.xlu0 %v2007_v11, %s2327_s25  ;;  %v2461_v17 = vld [vmem:[%s194_s22 + $0x10] sm:$0xff]  ;;  %v2012_v19 = vpack.i.bf16 %v2450_v13, %v2458_v16  ;;  %v2032_v21 = vpack.i.bf16 %v2458_v16, %v2440_v8  ;;  %v2037_v22 = vpack.i.bf16 %v2463_v18, %v2448_v12  ;;  %2047 = vset.pattern.permute.xlu2 %v2329_v33  ;;  %v395_v5 = vld [vmem:[%s3218_s2 + $0x38] sm:$0xff]  ;;  %vm3220_vm10 = vcmask 785408   ;;  %s1587_s7 = scalar_lea.hbm %s3219_s3, %s1932_s20  ;;  %s1588_s16 = sshll.u32 %s3149_s4, 4  ;;  %s1589_s16 = int_to_ptr.vmem [resolvable:$true] %s1588_s16 }
  0x2e   : > { %2018 = vrot.lane.b32.xlu1 %v2017_v14, %s2327_s25  ;;  %2028 = vrot.lane.b32.xlu2 %v2027_v15, %s2328_s26  ;;  %v2022_v20 = vpack.i.bf16 %v2463_v18, %v2461_v17  ;;  %v2042_v23 = vpack.i.bf16 %v2461_v17, %v2444_v10  ;;  %v2483_v28 = vadd.s32 128, %v2480_v25  ;;  %v230_v29 = vand.u32 15, %v2480_v25  ;;  %v394_v15 = vld [vmem:[%s3218_s2 + $0x30] sm:$0xff]  ;;  %s1576_s8 = scalar_lea.sflag [#allocation5], %s192_s19  ;;  %s2276_s22 = scalar_lea.hbm %s3219_s3, 128 }
  0x2f   : > { %v374_v58 = vpack.c.bf16 %v2458_v16, %v2440_v8  ;;  %v372_v2 = vpack.c.bf16 %v2461_v17, %v2444_v10  ;;  %v373_v3 = vpack.c.bf16 %v2463_v18, %v2448_v12 }
  0x30   : > { %v237_v30 = vand.u32 15, %v2483_v28  ;;  %vm1933_vm1 = vcmp.ne.s32.totalorder %v230_v29, 15  ;;  %vm1934_vm6 = vcmp.ne.s32.totalorder %v230_v29, 0 }
  0x31   : > { %vm2495_vm3 = vmpackc.low %vm1933_vm1, %vm1933_vm1 }
  0x32   : > { %vm1935_vm2 = vcmp.ne.s32.totalorder %v237_v30, 15  ;;  %vm1936_vm7 = vcmp.ne.s32.totalorder %v237_v30, 0  ;;  %vm2552_vm8 = vmpackc.low %vm1934_vm6, %vm1934_vm6 }
  0x33   : > { %vm2501_vm4 = vmpackc.low %vm1935_vm2, %vm1935_vm2 }
  0x34   : > { %vm2558_vm9 = vmpackc.low %vm1936_vm7, %vm1936_vm7 }
  0x35   : > { %2013 = vrot.lane.b32.xlu0 %v2012_v19, %s2327_s25 }
  0x36   : > { %2023 = vrot.lane.b32.xlu1 %v2022_v20, %s2327_s25  ;;  %2033 = vrot.lane.b32.xlu2 %v2032_v21, %s2328_s26 }
  0x3d   : > { %2038 = vrot.lane.b32.xlu0 %v2037_v22, %s2328_s26 }
  0x3e   : > { %2043 = vrot.lane.b32.xlu1 %v2042_v23, %s2328_s26  ;;  %428 = vperm.xlu2 %2047, %v394_v15  }
  0x45   : > { %433 = vperm.xlu0 %2048, %v395_v5  }
  0x46   : > { %418 = vperm.xlu1 %2049, %v392_v4  }
  0x88   : > { %v2487_v34 = vpop.permute.xlu2 %2028 }
  0x89   : > { %v2031_v62 = vunpack.i.h.bf16 %v2487_v34  ;;  %v2030_v63 = vunpack.i.l.bf16 %v2487_v34  ;;  %v393_v34 = vld [vmem:[%s3218_s2 + $0x28] sm:$0xff] }
  0x8a   : > { %423 = vperm.xlu2 %2047, %v393_v34  }
  0x90   : > { %v2034_v57 = vpop.permute.xlu2 %2033 }
  0x91   : > { %v2036_v0 = vunpack.i.h.bf16 %v2034_v57  ;;  %v2035_v1 = vunpack.i.l.bf16 %v2034_v57 }
  0x93   : > { %v305_v19 = vsel %vm3221_vm5, %v2030_v63, %v2035_v1  ;;  %v306_v20 = vsel %vm3221_vm5, %v2031_v62, %v2036_v0  ;;  %v293_v21 = vsel %vm3221_vm5, %v2035_v1, %v2030_v63  ;;  %v294_v22 = vsel %vm3221_vm5, %v2036_v0, %v2031_v62 }
  0x94   : > { %v1735_v30 = vpack.c.bf16 %v294_v22, %v293_v21 }
  0x9f   : > { %v2009_v26 = vpop.permute.xlu0 %2008 }
  0xa0   : > { %v2019_v27 = vpop.permute.xlu1 %2018  ;;  %v2011_v31 = vunpack.i.h.bf16 %v2009_v26  ;;  %v2010_v32 = vunpack.i.l.bf16 %v2009_v26  ;;  %v1711_v26 = vpack.c.bf16 %v306_v20, %v305_v19 }
  0xa1   : > { %v2021_v39 = vunpack.i.h.bf16 %v2019_v27  ;;  %v2020_v40 = vunpack.i.l.bf16 %v2019_v27 }
  0xa2   : > { %v338_v43 = vsel %vm3222_vm0, %v2010_v32, %v2011_v31  ;;  %v354_v46 = vsel %vm3222_vm0, %v2011_v31, %v2010_v32  ;;  %v390_v31 = vld [vmem:[%s3218_s2 + $0x10] sm:$0xff]  ;;  %v388_v32 = vld [vmem:[%s3218_s2] sm:$0xff] }
  0xa3   : > { %v336_v53 = vsel %vm3222_vm0, %v2020_v40, %v2021_v39  ;;  %v352_v55 = vsel %vm3222_vm0, %v2021_v39, %v2020_v40  ;;  %408 = vperm.xlu1 %2049, %v390_v31   ;;  %398 = vperm.xlu0 %2048, %v388_v32   ;;  %v391_v39 = vld [vmem:[%s3218_s2 + $0x18] sm:$0xff] }
  0xa4   : > { %413 = vperm.xlu2 %2047, %v391_v39   ;;  %v1923_v40 = vld [vmem:[#allocation3 + $0x18] sm:$0xff] }
  0xa7   : > { %v2014_v35 = vpop.permute.xlu0 %2013 }
  0xa8   : > { %v2016_v36 = vunpack.i.h.bf16 %v2014_v35  ;;  %v2015_v37 = vunpack.i.l.bf16 %v2014_v35  ;;  %v2024_v38 = vpop.permute.xlu1 %2023 }
  0xa9   : > { %v2026_v41 = vunpack.i.h.bf16 %v2024_v38  ;;  %v2025_v42 = vunpack.i.l.bf16 %v2024_v38  ;;  %v389_v38 = vld [vmem:[%s3218_s2 + $0x8] sm:$0xff] }
  0xaa   : > { %v339_v44 = vsel %vm3222_vm0, %v2015_v37, %v2016_v36  ;;  %v355_v47 = vsel %vm3222_vm0, %v2016_v36, %v2015_v37  ;;  %v1922_v36 = vld [vmem:[#allocation3 + $0x10] sm:$0xff]  ;;  %v1920_v37 = vld [vmem:[#allocation3] sm:$0xff] }
  0xab   : > { %v1701_v48 = vpack.c.bf16 %v339_v44, %v338_v43  ;;  %v1725_v50 = vpack.c.bf16 %v355_v47, %v354_v46  ;;  %v337_v51 = vsel %vm3222_vm0, %v2025_v42, %v2026_v41  ;;  %v353_v52 = vsel %vm3222_vm0, %v2026_v41, %v2025_v42  ;;  %403 = vperm.xlu1 %2049, %v389_v38   ;;  %v1921_v41 = vld [vmem:[#allocation3 + $0x8] sm:$0xff]  ;;  %v429_v42 = vpop.permute.xlu2 %428 }
  0xac   : > { %v1706_v54 = vpack.c.bf16 %v337_v51, %v336_v53  ;;  %v1730_v56 = vpack.c.bf16 %v353_v52, %v352_v55 }
  0xad   : > { %1702 = vmatpush.bf16.msk.msra.mxu0 %vm2495_vm3, %v1701_v48  ;;  %1937 = vmatpush.bf16.msk.msra.mxu2 %vm2495_vm3, %v1701_v48 }
  0xae   : > { %1726 = vmatpush.bf16.msk.msra.mxu1 %vm2501_vm4, %v1725_v50  ;;  %1943 = vmatpush.bf16.msk.msra.mxu3 %vm2501_vm4, %v1725_v50 }
  0xaf   : > { %v2039_v60 = vpop.permute.xlu0 %2038 }
  0xb0   : > { %v2044_v61 = vpop.permute.xlu1 %2043  ;;  %v2041_v6 = vunpack.i.h.bf16 %v2039_v60  ;;  %v2040_v7 = vunpack.i.l.bf16 %v2039_v60 }
  0xb1   : > { %1707 = vmatpush.bf16.msk.msra.mxu0 %vm2495_vm3, %v1706_v54  ;;  %1938 = vmatpush.bf16.msk.msra.mxu2 %vm2495_vm3, %v1706_v54  ;;  %v2046_v11 = vunpack.i.h.bf16 %v2044_v61  ;;  %v2045_v14 = vunpack.i.l.bf16 %v2044_v61 }
  0xb2   : > { %1731 = vmatpush.bf16.msk.msra.mxu1 %vm2501_vm4, %v1730_v56  ;;  %1944 = vmatpush.bf16.msk.msra.mxu3 %vm2501_vm4, %v1730_v56 }
  0xb3   : > { %v303_v24 = vsel %vm3221_vm5, %v2040_v7, %v2045_v14  ;;  %v304_v25 = vsel %vm3221_vm5, %v2041_v6, %v2046_v11  ;;  %v291_v28 = vsel %vm3221_vm5, %v2045_v14, %v2040_v7  ;;  %v292_v29 = vsel %vm3221_vm5, %v2046_v11, %v2041_v6 }
  0xb4   : > { %v1716_v33 = vpack.c.bf16 %v304_v25, %v303_v24  ;;  %v1740_v35 = vpack.c.bf16 %v292_v29, %v291_v28 }
  0xb5   : > { %473 = vmatpush.bf16.msra.mxu0 %v374_v58  ;;  %1939 = vmatpush.bf16.msra.mxu2 %v374_v58 }
  0xb6   : > { %502 = vmatpush.bf16.msra.mxu1 %v375_v59  ;;  %1945 = vmatpush.bf16.msra.mxu3 %v375_v59 }
  0xb7   : > { %v434_v53 = vpop.permute.xlu0 %433 }
  0xb8   : > { %v419_v43 = vpop.permute.xlu1 %418 }
  0xb9   : > { %474 = vmatpush.bf16.msra.mxu0 %v372_v2  ;;  %1940 = vmatpush.bf16.msra.mxu2 %v372_v2 }
  0xba   : > { %503 = vmatpush.bf16.msra.mxu1 %v373_v3  ;;  %1946 = vmatpush.bf16.msra.mxu3 %v373_v3 }
  0xbd   : > { %1712 = vmatpush.bf16.msk.msra.mxu0 %vm2552_vm8, %v1711_v26  ;;  %1941 = vmatpush.bf16.msk.msra.mxu2 %vm2552_vm8, %v1711_v26 }
  0xbe   : > { %1736 = vmatpush.bf16.msk.msra.mxu1 %vm2558_vm9, %v1735_v30  ;;  %1947 = vmatpush.bf16.msk.msra.mxu3 %vm2558_vm9, %v1735_v30 }
  0xc1   : > { %1717 = vmatpush.bf16.msk.msra.mxu0 %vm2552_vm8, %v1716_v33  ;;  %1942 = vmatpush.bf16.msk.msra.mxu2 %vm2552_vm8, %v1716_v33 }
  0xc2   : > { %1741 = vmatpush.bf16.msk.msra.mxu1 %vm2558_vm9, %v1740_v35  ;;  %1948 = vmatpush.bf16.msk.msra.mxu3 %vm2558_vm9, %v1740_v35 }
  0xc4   : > { %1720 = vmatmul.msk.bf16.vlgmr.msra.gmra.mxu2 %vm3220_vm10, %v1922_v36  ;;  %1718 = vmatmul.msk.bf16.vlgmr.msra.gmra.mxu0 %vm3220_vm10, %v1920_v37 }
  0xc5   : > { %1744 = vmatmul.msk.bf16.vlgmr.msra.gmra.mxu3 %vm3220_vm10, %v1922_v36  ;;  %1742 = vmatmul.msk.bf16.vlgmr.msra.gmra.mxu1 %vm3220_vm10, %v1920_v37 }
  0xd4   : > { %1721 = vmatmul.msk.bf16.gmra.mxu2 %vm3220_vm10, %v1923_v40  ;;  %1719 = vmatmul.msk.bf16.gmra.mxu0 %vm3220_vm10, %v1921_v41 }
  0xd5   : > { %1745 = vmatmul.msk.bf16.gmra.mxu3 %vm3220_vm10, %v1923_v40  ;;  %1743 = vmatmul.msk.bf16.gmra.mxu1 %vm3220_vm10, %v1921_v41 }
  0xe4   : > { %v424_v52 = vpop.permute.xlu2 %423 }
 0x115   : > { %v2603_v55 = vpop.permute.xlu1 %408  ;;  %v399_v6 = vpop.permute.xlu0 %398 }
 0x11d   : > { %v404_v11 = vpop.permute.xlu1 %403 }
 0x141   : > { %v478_v58 = vpop.f32.mrf.mxu0 }
 0x142   : > { %v507_v62 = vpop.f32.mrf.mxu1  ;;  %v479_v24 = vadd.f32 %v478_v58, %v399_v6 }
 0x143   : > { %v2607_v29 = vadd.f32 %v507_v62, %v399_v6 }
 0x147   : > { %v488_v44 = vpop.f32.mrf.mxu2 }
 0x148   : > { %v489_v46 = vadd.f32 %v488_v44, %v419_v43  ;;  %v517_v47 = vpop.f32.mrf.mxu3 }
 0x149   : > { %v518_v48 = vadd.f32 %v517_v47, %v419_v43  ;;  %v480_v19 = vpop.f32.mrf.mxu0 }
 0x14a   : > { %v1746_v50 = vmul.f32 -1.442695, %v489_v46  ;;  %v509_v28 = vpop.f32.mrf.mxu1  ;;  %v2609_v30 = vadd.f32 %v480_v19, %v404_v11 }
 0x14b   : > { %v1747_v51 = vmul.f32 -1.442695, %v518_v48  ;;  %v2612_v34 = vadd.f32 %v509_v28, %v404_v11 }
 0x14c   : > { %2130 = vpow2.f32 %v1746_v50 }
 0x14d   : > { %2132 = vpow2.f32 %v1747_v51 }
 0x14f   : > { %v490_v54 = vpop.f32.mrf.mxu2 }
 0x150   : > { %v491_v56 = vadd.f32 %v490_v54, %v424_v52  ;;  %v519_v57 = vpop.f32.mrf.mxu3 }
 0x151   : > { %v520_v59 = vadd.f32 %v519_v57, %v424_v52 }
 0x152   : > { %v2131_v60 = vpop.eup %2130  ;;  %v1748_v61 = vmul.f32 -1.442695, %v491_v56 }
 0x153   : > { %v2133_v63 = vpop.eup %2132  ;;  %v551_v0 = vadd.f32 1.0, %v2131_v60  ;;  %v1749_v1 = vmul.f32 -1.442695, %v520_v59 }
 0x154   : > { %v552_v2 = vadd.f32 1.0, %v2133_v63  ;;  %2134 = vpow2.f32 %v1748_v61 }
 0x155   : > { %2136 = vrcp.f32 %v551_v0  ;;  %v568_v33 = vand.u32 2147483647, %v551_v0  ;;  %v570_v37 = vand.u32 2147483648, %v551_v0  ;;  %vm564_vm11 = vweird.f32 %v551_v0 }
 0x156   : > { %2138 = vrcp.f32 %v552_v2  ;;  %v583_v39 = vand.u32 2147483647, %v552_v2  ;;  %v585_v40 = vand.u32 2147483648, %v552_v2  ;;  %vm579_vm13 = vweird.f32 %v552_v2 }
 0x157   : > { %2140 = vpow2.f32 %v1749_v1  ;;  %v493_v3 = vpop.f32.mrf.mxu2  ;;  %vm2617_vm15 = vcmp.eq.f32.partialorder %v568_v33, 8.507059e+37  ;;  %v571_v52 = vor.u32 1.1754944e-38, %v570_v37 }
 0x158   : > { %v494_v4 = vadd.f32 %v493_v3, %v429_v42  ;;  %v522_v5 = vpop.f32.mrf.mxu3  ;;  %vm2626_vm2 = vcmp.eq.f32.partialorder %v583_v39, 8.507059e+37  ;;  %v586_v1 = vor.u32 1.1754944e-38, %v585_v40 }
 0x159   : > { %v523_v7 = vadd.f32 %v522_v5, %v429_v42 }
 0x15a   : > { %v2135_v14 = vpop.eup %2134  ;;  %v1750_v15 = vmul.f32 -1.442695, %v494_v4 }
 0x15b   : > { %v2137_v20 = vpop.eup %2136  ;;  %v2605_v21 = vadd.f32 1.0, %v2135_v14  ;;  %v1751_v22 = vmul.f32 -1.442695, %v523_v7  ;;  %v512_v14 = vpop.f32.mrf.mxu1 }
 0x15c   : > { %v2139_v25 = vpop.eup %2138  ;;  %v560_v26 = vmul.f32 %v2137_v20, %v551_v0  ;;  %2142 = vpow2.f32 %v1750_v15  ;;  %vm565_vm12 = vweird.f32 %v2137_v20  ;;  %v483_v0 = vpop.f32.mrf.mxu0 }
 0x15d   : > { %v2141_v31 = vpop.eup %2140  ;;  %v575_v32 = vmul.f32 %v2139_v25, %v552_v2  ;;  %2144 = vrcp.f32 %v2605_v21  ;;  %vm580_vm14 = vweird.f32 %v2139_v25  ;;  %vm566_vm1 = vmor %vm564_vm11, %vm565_vm12  ;;  %v598_v7 = vand.u32 2147483647, %v2605_v21 }
 0x15e   : > { %v2614_v35 = vadd.f32 1.0, %v2141_v31  ;;  %2146 = vpow2.f32 %v1751_v22  ;;  %v561_v36 = vsub.f32 1.0, %v560_v26  ;;  %vm2634_vm6 = vmor %vm579_vm13, %vm580_vm14  ;;  %v600_v11 = vand.u32 2147483648, %v2605_v21 }
 0x15f   : > { %v576_v38 = vsub.f32 1.0, %v575_v32  ;;  %v495_v41 = vpop.f32.mrf.mxu2  ;;  %vm594_vm7 = vweird.f32 %v2605_v21  ;;  %v2660_v32 = vadd.f32 %v512_v14, %v2603_v55  ;;  %vm2664_vm12 = vcmp.eq.f32.partialorder %v598_v7, 8.507059e+37 }
 0x160   : > { %2148 = vrcp.f32 %v2614_v35  ;;  %v562_v42 = vmul.f32 %v2137_v20, %v561_v36  ;;  %v496_v43 = vadd.f32 %v495_v41, %v434_v53  ;;  %v524_v44 = vpop.f32.mrf.mxu3  ;;  %v613_v26 = vand.u32 2147483647, %v2614_v35 }
 0x161   : > { %v577_v46 = vmul.f32 %v2139_v25, %v576_v38  ;;  %v525_v47 = vadd.f32 %v524_v44, %v434_v53  ;;  %v615_v28 = vand.u32 2147483648, %v2614_v35  ;;  %v601_v38 = vor.u32 1.1754944e-38, %v600_v11 }
 0x162   : > { %v2143_v48 = vpop.eup %2142  ;;  %v563_v50 = vadd.f32 %v2137_v20, %v562_v42  ;;  %v1752_v54 = vmul.f32 -1.442695, %v496_v43  ;;  %vm609_vm13 = vweird.f32 %v2614_v35 }
 0x163   : > { %v2621_v56 = vpop.eup %2144  ;;  %v2623_v57 = vadd.f32 1.0, %v2143_v48  ;;  %v578_v58 = vadd.f32 %v2139_v25, %v577_v46  ;;  %v1753_v53 = vmul.f32 -1.442695, %v525_v47  ;;  %v616_v44 = vor.u32 1.1754944e-38, %v615_v28  ;;  %v414_v28 = vpop.permute.xlu2 %413 }
 0x164   : > { %v2147_v60 = vpop.eup %2146  ;;  %v590_v61 = vmul.f32 %v2621_v56, %v2605_v21  ;;  %v567_v62 = vsel %vm566_vm1, %v2137_v20, %v563_v50  ;;  %2150 = vpow2.f32 %v1752_v54  ;;  %v2652_v20 = vadd.f32 %v483_v0, %v2603_v55 }
 0x165   : > { %2152 = vrcp.f32 %v2623_v57  ;;  %v2639_v3 = vadd.f32 1.0, %v2147_v60  ;;  %v572_v4 = vsel %vm2617_vm15, %v571_v52, %v567_v62  ;;  %v582_v5 = vsel %vm2634_vm6, %v2139_v25, %v578_v58 }
 0x166   : > { %v2149_v6 = vpop.eup %2148  ;;  %2154 = vpow2.f32 %v1753_v53  ;;  %v591_v2 = vsub.f32 1.0, %v590_v61  ;;  %v587_v19 = vsel %vm2626_vm2, %v586_v1, %v582_v5  ;;  %v679_v22 = vmul.f32 %v572_v4, %v479_v24 }
 0x167   : > { %v605_v15 = vmul.f32 %v2149_v6, %v2614_v35  ;;  %2156 = vrcp.f32 %v2639_v3  ;;  %vm595_vm11 = vweird.f32 %v2621_v56  ;;  %v680_v36 = vmul.f32 %v587_v19, %v2607_v29 }
 0x168   : > { %v592_v25 = vmul.f32 %v2621_v56, %v591_v2  ;;  %vm610_vm14 = vweird.f32 %v2149_v6  ;;  %v687_v55 = vadd.f32 %v679_v22, %v2444_v10  ;;  %vm2676_vm15 = vmor %vm594_vm7, %vm595_vm11  ;;  %vm2680_vm1 = vcmp.eq.f32.partialorder %v613_v26, 8.507059e+37 }
 0x169   : > { %v606_v31 = vsub.f32 1.0, %v605_v15  ;;  %v688_v48 = vadd.f32 %v680_v36, %v2448_v12  ;;  %vm611_vm2 = vmor %vm609_vm13, %vm610_vm14  ;;  %vm624_vm6 = vweird.f32 %v2623_v57  ;;  %v628_v54 = vand.u32 2147483647, %v2623_v57 }
 0x16a   : > { %v2151_v33 = vpop.eup %2150  ;;  %v593_v37 = vadd.f32 %v2621_v56, %v592_v25  ;;  %v630_v58 = vand.u32 2147483648, %v2623_v57  ;;  %v2699_v12 = vmul.f32 0.70710677, %v687_v55  ;;  %v643_v61 = vand.u32 2147483647, %v2639_v3 }
 0x16b   : > { %v2153_v39 = vpop.eup %2152  ;;  %v2668_v40 = vadd.f32 1.0, %v2151_v33  ;;  %v607_v41 = vmul.f32 %v2149_v6, %v606_v31  ;;  %v645_v62 = vand.u32 2147483648, %v2639_v3  ;;  %vm639_vm11 = vweird.f32 %v2639_v3 }
 0x16c   : > { %v2155_v42 = vpop.eup %2154  ;;  %v620_v46 = vmul.f32 %v2153_v39, %v2623_v57  ;;  %v597_v10 = vsel %vm2676_vm15, %v2621_v56, %v593_v37  ;;  %vm625_vm7 = vweird.f32 %v2153_v39  ;;  %v2706_v4 = vmul.f32 0.70710677, %v688_v48  ;;  %v485_v37 = vpop.f32.mrf.mxu0 }
 0x16d   : > { %v2157_v35 = vpop.eup %2156  ;;  %2158 = vrcp.f32 %v2668_v40  ;;  %v2686_v47 = vadd.f32 1.0, %v2155_v42  ;;  %v608_v21 = vadd.f32 %v2149_v6, %v607_v41  ;;  %v602_v59 = vsel %vm2664_vm12, %v601_v38, %v597_v10  ;;  %vm626_vm12 = vmor %vm624_vm6, %vm625_vm7  ;;  %v514_v38 = vpop.f32.mrf.mxu1 }
 0x16e   : > { %v621_v50 = vsub.f32 1.0, %v620_v46  ;;  %v635_v51 = vmul.f32 %v2157_v35, %v2639_v3  ;;  %vm640_vm13 = vweird.f32 %v2157_v35  ;;  %v681_v5 = vmul.f32 %v602_v59, %v2609_v30 }
 0x16f   : > { %2160 = vrcp.f32 %v2686_v47  ;;  %v612_v52 = vsel %vm611_vm2, %v2149_v6, %v608_v21  ;;  %vm629_vm14 = vcmp.eq.f32.partialorder %v628_v54, 8.507059e+37  ;;  %v631_v6 = vor.u32 1.1754944e-38, %v630_v58  ;;  %vm641_vm15 = vmor %vm639_vm11, %vm640_vm13 }
 0x170   : > { %v622_v56 = vmul.f32 %v2153_v39, %v621_v50  ;;  %v636_v53 = vsub.f32 1.0, %v635_v51  ;;  %v617_v60 = vsel %vm2680_vm1, %v616_v44, %v612_v52  ;;  %vm644_vm1 = vcmp.eq.f32.partialorder %v643_v61, 8.507059e+37 }
 0x171   : > { %v682_v2 = vmul.f32 %v617_v60, %v2612_v34  ;;  %v646_v3 = vor.u32 1.1754944e-38, %v645_v62  ;;  %vm654_vm2 = vweird.f32 %v2668_v40  ;;  %v658_v34 = vand.u32 2147483647, %v2668_v40 }
 0x172   : > { %v623_v63 = vadd.f32 %v2153_v39, %v622_v56  ;;  %v637_v1 = vmul.f32 %v2157_v35, %v636_v53  ;;  %v660_v31 = vand.u32 2147483648, %v2668_v40  ;;  %v675_v41 = vand.u32 2147483648, %v2686_v47 }
 0x173   : > { %v2159_v0 = vpop.eup %2158  ;;  %v2060_v42 = vpack.i.bf16 %v2706_v4, %v2699_v12  ;;  %v486_v44 = vadd.f32 %v485_v37, %v414_v28  ;;  %v515_v46 = vadd.f32 %v514_v38, %v414_v28  ;;  %vm669_vm13 = vweird.f32 %v2686_v47 }
 0x174   : > { %v627_v7 = vsel %vm626_vm12, %v2153_v39, %v623_v63  ;;  %v638_v11 = vadd.f32 %v2157_v35, %v637_v1  ;;  %v650_v14 = vmul.f32 %v2159_v0, %v2668_v40  ;;  %vm655_vm6 = vweird.f32 %v2159_v0 }
 0x175   : > { %v2161_v15 = vpop.eup %2160  ;;  %v632_v19 = vsel %vm629_vm14, %v631_v6, %v627_v7  ;;  %vm656_vm11 = vmor %vm654_vm2, %vm655_vm6  ;;  %2061 = vrot.lane.b32.xlu1 %v2060_v42, %s2327_s25  ;;  %vm659_vm12 = vcmp.eq.f32.partialorder %v658_v34, 8.507059e+37  ;;  %v690_v48 = vadd.f32 %v682_v2, %v2463_v18  ;;  %v676_v40 = vor.u32 1.1754944e-38, %v675_v41  ;;  %v1754_v2 = vld [vmem:[%s3218_s2 + $0x40] sm:$0xff]  ;;  %v1756_v7 = vld [vmem:[%s3218_s2 + $0x50] sm:$0xff] }
 0x176   : > { %v683_v30 = vmul.f32 %v632_v19, %v2652_v20  ;;  %v642_v22 = vsel %vm641_vm15, %v2157_v35, %v638_v11  ;;  %v651_v57 = vsub.f32 1.0, %v650_v14  ;;  %v665_v25 = vmul.f32 %v2161_v15, %v2686_v47  ;;  %v1758_v11 = vld [vmem:[%s3218_s2 + $0x60] sm:$0xff]  ;;  %v1755_v14 = vld [vmem:[%s3218_s2 + $0x48] sm:$0xff] }
 0x177   : > { %v647_v26 = vsel %vm644_vm1, %v646_v3, %v642_v22  ;;  %vm670_vm7 = vweird.f32 %v2161_v15  ;;  %v673_v20 = vand.u32 2147483647, %v2686_v47 }
 0x178   : > { %v691_v33 = vadd.f32 %v683_v30, %v2440_v8  ;;  %v684_v36 = vmul.f32 %v647_v26, %v2660_v32  ;;  %v652_v24 = vmul.f32 %v2159_v0, %v651_v57  ;;  %v666_v39 = vsub.f32 1.0, %v665_v25  ;;  %vm671_vm14 = vmor %vm669_vm13, %vm670_vm7 }
 0x179   : > { %v661_v32 = vor.u32 1.1754944e-38, %v660_v31  ;;  %vm674_vm15 = vcmp.eq.f32.partialorder %v673_v20, 8.507059e+37 }
 0x17a   : > { %v2724_v55 = vmul.f32 0.70710677, %v691_v33  ;;  %v692_v29 = vadd.f32 %v684_v36, %v2442_v9  ;;  %v653_v43 = vadd.f32 %v2159_v0, %v652_v24  ;;  %v667_v8 = vmul.f32 %v2161_v15, %v666_v39 }
 0x17b   : > { %v689_v9 = vadd.f32 %v681_v5, %v2461_v17  ;;  %v2743_v17 = vmul.f32 0.70710677, %v690_v48  ;;  %v1761_v5 = vld [vmem:[%s3218_s2 + $0x78] sm:$0xff] }
 0x17c   : > { %v2732_v35 = vmul.f32 0.70710677, %v692_v29  ;;  %v657_v10 = vsel %vm656_vm11, %v2159_v0, %v653_v43  ;;  %v668_v21 = vadd.f32 %v2161_v15, %v667_v8  ;;  %v1759_v0 = vld [vmem:[%s3218_s2 + $0x68] sm:$0xff] }
 0x17d   : > { %v662_v50 = vsel %vm659_vm12, %v661_v32, %v657_v10  ;;  %v2741_v56 = vmul.f32 0.70710677, %v689_v9  ;;  %v2080_v1 = vpack.i.bf16 %v2743_v17, %v2706_v4 }
 0x17e   : > { %v685_v51 = vmul.f32 %v662_v50, %v486_v44  ;;  %v672_v52 = vsel %vm671_vm14, %v2161_v15, %v668_v21  ;;  %v2050_v47 = vpack.i.bf16 %v2732_v35, %v2724_v55  ;;  %v1757_v15 = vld [vmem:[%s3218_s2 + $0x58] sm:$0xff] }
 0x17f   : > { %v677_v54 = vsel %vm674_vm15, %v676_v40, %v672_v52  ;;  %v2085_v6 = vpack.i.bf16 %v2741_v56, %v2699_v12 }
 0x180   : > { %v693_v58 = vadd.f32 %v685_v51, %v2458_v16  ;;  %v686_v59 = vmul.f32 %v677_v54, %v515_v46  ;;  %2051 = vrot.lane.b32.xlu2 %v2050_v47, %s2327_s25  ;;  %v2065_v16 = vpack.i.bf16 %v2743_v17, %v2741_v56  ;;  %v803_v54 = vpack.c.bf16 %v2741_v56, %v2699_v12 }
 0x182   : > { %v2745_v18 = vmul.f32 0.70710677, %v693_v58  ;;  %v694_v53 = vadd.f32 %v686_v59, %v2450_v13  ;;  %v1760_v13 = vld [vmem:[%s3218_s2 + $0x70] sm:$0xff]  ;;  %v804_v58 = vpack.c.bf16 %v2743_v17, %v2706_v4 }
 0x184   : > { %v2748_v60 = vmul.f32 0.70710677, %v694_v53  ;;  %v2075_v61 = vpack.i.bf16 %v2745_v18, %v2724_v55  ;;  %v805_v48 = vpack.c.bf16 %v2745_v18, %v2724_v55 }
 0x186   : > { %v2055_v62 = vpack.i.bf16 %v2748_v60, %v2745_v18  ;;  %2076 = vrot.lane.b32.xlu1 %v2075_v61, %s2328_s26  ;;  %v2070_v63 = vpack.i.bf16 %v2748_v60, %v2732_v35  ;;  %v806_v50 = vpack.c.bf16 %v2748_v60, %v2732_v35 }
 0x188   : > { %2056 = vrot.lane.b32.xlu0 %v2055_v62, %s2327_s25  ;;  %2066 = vrot.lane.b32.xlu2 %v2065_v16, %s2327_s25 }
 0x18e   : > { %861 = vperm.xlu1 %2049, %v1760_v13  }
 0x190   : > { %2071 = vrot.lane.b32.xlu0 %v2070_v63, %s2328_s26  ;;  %2081 = vrot.lane.b32.xlu2 %v2080_v1, %s2328_s26 }
 0x196   : > { %856 = vperm.xlu1 %2049, %v1759_v0  }
 0x198   : > { %866 = vperm.xlu2 %2047, %v1761_v5   ;;  %2086 = vrot.lane.b32.xlu0 %v2085_v6, %s2328_s26 }
 0x19e   : > { %831 = vperm.xlu1 %2049, %v1754_v2  }
 0x1a0   : > { %841 = vperm.xlu2 %2047, %v1756_v7   ;;  %851 = vperm.xlu0 %2048, %v1758_v11  }
 0x1a8   : > { %836 = vperm.xlu2 %2047, %v1755_v14   ;;  %846 = vperm.xlu0 %2048, %v1757_v15  }
 0x1da   : > { %v2052_v19 = vpop.permute.xlu2 %2051 }
 0x1db   : > { %v2054_v22 = vunpack.i.h.bf16 %v2052_v19  ;;  %v2053_v57 = vunpack.i.l.bf16 %v2052_v19  ;;  %v1924_v19 = vld [vmem:[#allocation3 + $0x20] sm:$0xff] }
 0x1dd   : > { %v773_v37 = vsel %vm3222_vm0, %v2053_v57, %v2054_v22  ;;  %v789_v38 = vsel %vm3222_vm0, %v2054_v22, %v2053_v57  ;;  %v1927_v22 = vld [vmem:[#allocation3 + $0x38] sm:$0xff] }
 0x1e2   : > { %v2067_v3 = vpop.permute.xlu2 %2066 }
 0x1e3   : > { %v2069_v25 = vunpack.i.h.bf16 %v2067_v3  ;;  %v2068_v26 = vunpack.i.l.bf16 %v2067_v3  ;;  %v1925_v3 = vld [vmem:[#allocation3 + $0x28] sm:$0xff] }
 0x1e5   : > { %v772_v29 = vsel %vm3222_vm0, %v2068_v26, %v2069_v25  ;;  %v788_v8 = vsel %vm3222_vm0, %v2069_v25, %v2068_v26 }
 0x1e7   : > { %v2062_v30 = vpop.permute.xlu1 %2061 }
 0x1e8   : > { %v2064_v34 = vunpack.i.h.bf16 %v2062_v30  ;;  %v2063_v31 = vunpack.i.l.bf16 %v2062_v30  ;;  %v1926_v30 = vld [vmem:[#allocation3 + $0x30] sm:$0xff] }
 0x1ea   : > { %v771_v42 = vsel %vm3222_vm0, %v2063_v31, %v2064_v34  ;;  %v787_v43 = vsel %vm3222_vm0, %v2064_v34, %v2063_v31  ;;  %v2082_v52 = vpop.permute.xlu2 %2081 }
 0x1eb   : > { %v1786_v32 = vpack.c.bf16 %v772_v29, %v771_v42  ;;  %v1810_v46 = vpack.c.bf16 %v788_v8, %v787_v43  ;;  %v2084_v63 = vunpack.i.h.bf16 %v2082_v52  ;;  %v2083_v1 = vunpack.i.l.bf16 %v2082_v52 }
 0x1f2   : > { %v867_v43 = vpop.permute.xlu2 %866 }
 0x1f8   : > { %v2077_v10 = vpop.permute.xlu1 %2076 }
 0x1f9   : > { %v2079_v40 = vunpack.i.h.bf16 %v2077_v10  ;;  %v2078_v51 = vunpack.i.l.bf16 %v2077_v10 }
 0x1fa   : > { %v2057_v28 = vpop.permute.xlu0 %2056  ;;  %v842_v52 = vpop.permute.xlu2 %841 }
 0x1fb   : > { %v2059_v33 = vunpack.i.h.bf16 %v2057_v28  ;;  %v2058_v36 = vunpack.i.l.bf16 %v2057_v28 }
 0x1fd   : > { %v774_v24 = vsel %vm3222_vm0, %v2058_v36, %v2059_v33  ;;  %v790_v39 = vsel %vm3222_vm0, %v2059_v33, %v2058_v36 }
 0x1fe   : > { %v1781_v20 = vpack.c.bf16 %v774_v24, %v773_v37  ;;  %v1805_v41 = vpack.c.bf16 %v790_v39, %v789_v38 }
 0x200   : > { %1782 = vmatpush.bf16.msk.msrb.mxu2 %vm2495_vm3, %v1781_v20  ;;  %1806 = vmatpush.bf16.msk.msrb.mxu3 %vm2501_vm4, %v1805_v41  ;;  %v862_v37 = vpop.permute.xlu1 %861 }
 0x202   : > { %v2072_v44 = vpop.permute.xlu0 %2071 }
 0x203   : > { %v2074_v21 = vunpack.i.h.bf16 %v2072_v44  ;;  %v2073_v9 = vunpack.i.l.bf16 %v2072_v44 }
 0x204   : > { %1787 = vmatpush.bf16.msk.msrb.mxu2 %vm2495_vm3, %v1786_v32  ;;  %1811 = vmatpush.bf16.msk.msrb.mxu3 %vm2501_vm4, %v1810_v46 }
 0x205   : > { %v745_v59 = vsel %vm3221_vm5, %v2073_v9, %v2078_v51  ;;  %v746_v53 = vsel %vm3221_vm5, %v2074_v21, %v2079_v40  ;;  %v733_v16 = vsel %vm3221_vm5, %v2078_v51, %v2073_v9  ;;  %v734_v13 = vsel %vm3221_vm5, %v2079_v40, %v2074_v21 }
 0x206   : > { %v1791_v0 = vpack.c.bf16 %v746_v53, %v745_v59  ;;  %v1815_v5 = vpack.c.bf16 %v734_v13, %v733_v16 }
 0x208   : > { %905 = vmatpush.bf16.msrb.mxu2 %v805_v48  ;;  %934 = vmatpush.bf16.msrb.mxu3 %v806_v50  ;;  %v857_v8 = vpop.permute.xlu1 %856 }
 0x20a   : > { %v2087_v47 = vpop.permute.xlu0 %2086 }
 0x20b   : > { %v2089_v61 = vunpack.i.h.bf16 %v2087_v47  ;;  %v2088_v62 = vunpack.i.l.bf16 %v2087_v47 }
 0x20c   : > { %906 = vmatpush.bf16.msrb.mxu2 %v803_v54  ;;  %935 = vmatpush.bf16.msrb.mxu3 %v804_v58 }
 0x20d   : > { %v743_v6 = vsel %vm3221_vm5, %v2083_v1, %v2088_v62  ;;  %v744_v2 = vsel %vm3221_vm5, %v2084_v63, %v2089_v61  ;;  %v731_v7 = vsel %vm3221_vm5, %v2088_v62, %v2083_v1  ;;  %v732_v11 = vsel %vm3221_vm5, %v2089_v61, %v2084_v63 }
 0x20e   : > { %v1796_v14 = vpack.c.bf16 %v744_v2, %v743_v6  ;;  %v1820_v15 = vpack.c.bf16 %v732_v11, %v731_v7 }
 0x210   : > { %1792 = vmatpush.bf16.msk.msrb.mxu2 %vm2552_vm8, %v1791_v0  ;;  %1816 = vmatpush.bf16.msk.msrb.mxu3 %vm2558_vm9, %v1815_v5 }
 0x212   : > { %v852_v24 = vpop.permute.xlu0 %851 }
 0x214   : > { %1797 = vmatpush.bf16.msk.msrb.mxu2 %vm2552_vm8, %v1796_v14  ;;  %1821 = vmatpush.bf16.msk.msrb.mxu3 %vm2558_vm9, %v1820_v15  ;;  %v2866_v15 = vpop.permute.xlu2 %836 }
 0x217   : > { %1798 = vmatmul.msk.bf16.vlgmr.msrb.gmra.mxu2 %vm3220_vm10, %v1924_v19  ;;  %1822 = vmatmul.msk.bf16.vlgmr.msrb.gmra.mxu3 %vm3220_vm10, %v1924_v19  ;;  %v832_v19 = vpop.permute.xlu1 %831 }
 0x227   : > { %1799 = vmatmul.msk.bf16.gmra.mxu2 %vm3220_vm10, %v1925_v3  ;;  %1823 = vmatmul.msk.bf16.gmra.mxu3 %vm3220_vm10, %v1925_v3 }
 0x237   : > { %1800 = vmatmul.msk.bf16.gmra.mxu2 %vm3220_vm10, %v1926_v30  ;;  %1824 = vmatmul.msk.bf16.gmra.mxu3 %vm3220_vm10, %v1926_v30 }
 0x247   : > { %1801 = vmatmul.msk.bf16.gmra.mxu2 %vm3220_vm10, %v1927_v22  ;;  %1825 = vmatmul.msk.bf16.gmra.mxu3 %vm3220_vm10, %v1927_v22 }
 0x29a   : > { %v910_v57 = vpop.f32.mrf.mxu2  ;;  %v939_v25 = vpop.f32.mrf.mxu3 }
 0x29b   : > { %v911_v30 = vadd.f32 %v910_v57, %v832_v19  ;;  %v940_v22 = vadd.f32 %v939_v25, %v832_v19 }
 0x2a2   : > { %v912_v26 = vpop.f32.mrf.mxu2  ;;  %v2840_v28 = vpop.f32.mrf.mxu3 }
 0x2aa   : > { %v2842_v34 = vpop.f32.mrf.mxu2  ;;  %v2844_v31 = vpop.f32.mrf.mxu3 }
 0x2b2   : > { %v2846_v33 = vpop.f32.mrf.mxu2  ;;  %v2848_v36 = vpop.f32.mrf.mxu3 }
 0x2ba   : > { %v920_v38 = vpop.f32.mrf.mxu2  ;;  %v949_v39 = vpop.f32.mrf.mxu3 }
 0x2bb   : > { %v921_v20 = vadd.f32 %v920_v38, %v852_v24  ;;  %v950_v41 = vadd.f32 %v949_v39, %v852_v24 }
 0x2bd   : > { %v1826_v42 = vmul.f32 -1.442695, %v921_v20  ;;  %v1827_v29 = vmul.f32 -1.442695, %v950_v41 }
 0x2bf   : > { %2162 = vpow2.f32 %v1826_v42 }
 0x2c0   : > { %2164 = vpow2.f32 %v1827_v29  ;;  %v2876_v29 = vadd.f32 %v2842_v34, %v842_v52 }
 0x2c2   : > { %v922_v44 = vpop.f32.mrf.mxu2  ;;  %v951_v32 = vpop.f32.mrf.mxu3 }
 0x2c3   : > { %v923_v46 = vadd.f32 %v922_v44, %v857_v8  ;;  %v952_v10 = vadd.f32 %v951_v32, %v857_v8 }
 0x2c5   : > { %v2163_v21 = vpop.eup %2162  ;;  %v1828_v9 = vmul.f32 -1.442695, %v923_v46  ;;  %v1829_v40 = vmul.f32 -1.442695, %v952_v10 }
 0x2c6   : > { %v2165_v48 = vpop.eup %2164  ;;  %v2850_v50 = vadd.f32 1.0, %v2163_v21 }
 0x2c7   : > { %v2852_v51 = vadd.f32 1.0, %v2165_v48  ;;  %2166 = vpow2.f32 %v1828_v9 }
 0x2c8   : > { %2168 = vrcp.f32 %v2850_v50  ;;  %vm996_vm2 = vweird.f32 %v2850_v50  ;;  %v1002_v57 = vand.u32 2147483648, %v2850_v50 }
 0x2c9   : > { %2170 = vrcp.f32 %v2852_v51  ;;  %v1015_v8 = vand.u32 2147483647, %v2852_v51  ;;  %v1017_v34 = vand.u32 2147483648, %v2852_v51  ;;  %vm1011_vm13 = vweird.f32 %v2852_v51 }
 0x2ca   : > { %2172 = vpow2.f32 %v1829_v40  ;;  %v925_v47 = vpop.f32.mrf.mxu2  ;;  %v954_v54 = vpop.f32.mrf.mxu3  ;;  %v2902_v40 = vadd.f32 %v2844_v31, %v842_v52 }
 0x2cb   : > { %v926_v58 = vadd.f32 %v925_v47, %v862_v37  ;;  %v955_v59 = vadd.f32 %v954_v54, %v862_v37  ;;  %v2870_v37 = vadd.f32 %v912_v26, %v2866_v15  ;;  %v1000_v26 = vand.u32 2147483647, %v2850_v50 }
 0x2cc   : > { %v1003_v47 = vor.u32 1.1754944e-38, %v1002_v57  ;;  %vm1016_vm14 = vcmp.eq.f32.partialorder %v1015_v8, 8.507059e+37 }
 0x2cd   : > { %v2167_v53 = vpop.eup %2166  ;;  %v1830_v61 = vmul.f32 -1.442695, %v926_v58  ;;  %v1831_v13 = vmul.f32 -1.442695, %v955_v59  ;;  %vm1001_vm11 = vcmp.eq.f32.partialorder %v1000_v26, 8.507059e+37 }
 0x2ce   : > { %v2169_v62 = vpop.eup %2168  ;;  %v2856_v16 = vadd.f32 1.0, %v2167_v53  ;;  %v1018_v53 = vor.u32 1.1754944e-38, %v1017_v34 }
 0x2cf   : > { %v2858_v63 = vpop.eup %2170  ;;  %v992_v1 = vmul.f32 %v2169_v62, %v2850_v50  ;;  %2174 = vpow2.f32 %v1830_v61  ;;  %vm997_vm1 = vweird.f32 %v2169_v62 }
 0x2d0   : > { %v2173_v0 = vpop.eup %2172  ;;  %v1007_v5 = vmul.f32 %v2858_v63, %v2852_v51  ;;  %2176 = vrcp.f32 %v2856_v16  ;;  %vm2887_vm6 = vmor %vm996_vm2, %vm997_vm1  ;;  %vm1012_vm7 = vweird.f32 %v2858_v63  ;;  %v1032_v59 = vand.u32 2147483648, %v2856_v16 }
 0x2d1   : > { %v993_v6 = vsub.f32 1.0, %v992_v1  ;;  %v2864_v2 = vadd.f32 1.0, %v2173_v0  ;;  %2178 = vpow2.f32 %v1831_v13  ;;  %vm1013_vm12 = vmor %vm1011_vm13, %vm1012_vm7  ;;  %v1030_v52 = vand.u32 2147483647, %v2856_v16 }
 0x2d2   : > { %v1008_v7 = vsub.f32 1.0, %v1007_v5  ;;  %v927_v11 = vpop.f32.mrf.mxu2  ;;  %v956_v14 = vpop.f32.mrf.mxu3  ;;  %vm1026_vm15 = vweird.f32 %v2856_v16 }
 0x2d3   : > { %v994_v3 = vmul.f32 %v2169_v62, %v993_v6  ;;  %2180 = vrcp.f32 %v2864_v2  ;;  %v928_v20 = vadd.f32 %v927_v11, %v867_v43  ;;  %v957_v41 = vadd.f32 %v956_v14, %v867_v43 }
 0x2d4   : > { %v1009_v39 = vmul.f32 %v2858_v63, %v1008_v7  ;;  %v1045_v0 = vand.u32 2147483647, %v2864_v2  ;;  %v1033_v7 = vor.u32 1.1754944e-38, %v1032_v59  ;;  %vm1041_vm1 = vweird.f32 %v2864_v2 }
 0x2d5   : > { %v2175_v24 = vpop.eup %2174  ;;  %v995_v38 = vadd.f32 %v2169_v62, %v994_v3  ;;  %v1832_v32 = vmul.f32 -1.442695, %v928_v20  ;;  %v1833_v10 = vmul.f32 -1.442695, %v957_v41 }
 0x2d6   : > { %v2873_v42 = vpop.eup %2176  ;;  %v2880_v25 = vadd.f32 1.0, %v2175_v24  ;;  %v1010_v9 = vadd.f32 %v2858_v63, %v1009_v39  ;;  %vm2931_vm7 = vcmp.eq.f32.partialorder %v1045_v0, 8.507059e+37 }
 0x2d7   : > { %v1022_v44 = vmul.f32 %v2873_v42, %v2856_v16  ;;  %v2179_v43 = vpop.eup %2178  ;;  %v999_v50 = vsel %vm2887_vm6, %v2169_v62, %v995_v38  ;;  %vm1027_vm2 = vweird.f32 %v2873_v42  ;;  %vm2924_vm6 = vcmp.eq.f32.partialorder %v1030_v52, 8.507059e+37 }
 0x2d8   : > { %2182 = vrcp.f32 %v2880_v25  ;;  %v2897_v48 = vadd.f32 1.0, %v2179_v43  ;;  %v1004_v31 = vsel %vm1001_vm11, %v1003_v47, %v999_v50  ;;  %v1014_v62 = vsel %vm1013_vm12, %v2858_v63, %v1010_v9  ;;  %vm2950_vm12 = vmor %vm1026_vm15, %vm1027_vm2 }
 0x2d9   : > { %v2894_v21 = vpop.eup %2180  ;;  %2184 = vpow2.f32 %v1832_v32  ;;  %v1023_v54 = vsub.f32 1.0, %v1022_v44  ;;  %v1111_v13 = vmul.f32 %v1004_v31, %v911_v30  ;;  %v1019_v5 = vsel %vm1016_vm14, %v1018_v53, %v1014_v62 }
 0x2da   : > { %v1037_v58 = vmul.f32 %v2894_v21, %v2864_v2  ;;  %2186 = vrcp.f32 %v2897_v48  ;;  %v1112_v14 = vmul.f32 %v1019_v5, %v940_v22  ;;  %v1047_v63 = vand.u32 2147483648, %v2864_v2 }
 0x2db   : > { %2188 = vpow2.f32 %v1833_v10  ;;  %v1024_v51 = vmul.f32 %v2873_v42, %v1023_v54  ;;  %v1119_v19 = vadd.f32 %v1111_v13, %v2699_v12  ;;  %v1060_v22 = vand.u32 2147483647, %v2880_v25 }
 0x2dc   : > { %v1038_v61 = vsub.f32 1.0, %v1037_v58  ;;  %v1120_v12 = vadd.f32 %v1112_v14, %v2706_v4  ;;  %v1062_v26 = vand.u32 2147483648, %v2880_v25  ;;  %vm1042_vm13 = vweird.f32 %v2894_v21 }
 0x2dd   : > { %v1025_v41 = vadd.f32 %v2873_v42, %v1024_v51  ;;  %v2940_v43 = vmul.f32 0.70710677, %v1119_v19  ;;  %vm1056_vm14 = vweird.f32 %v2880_v25  ;;  %v1077_v50 = vand.u32 2147483648, %v2897_v48  ;;  %vm2960_vm0 = vmor %vm1041_vm1, %vm1042_vm13 }
 0x2de   : > { %v2183_v1 = vpop.eup %2182  ;;  %v1039_v3 = vmul.f32 %v2894_v21, %v1038_v61  ;;  %v2944_v34 = vmul.f32 0.70710677, %v1120_v12  ;;  %v1063_v47 = vor.u32 1.1754944e-38, %v1062_v26  ;;  %v1075_v58 = vand.u32 2147483647, %v2897_v48 }
 0x2df   : > { %v2185_v6 = vpop.eup %2184  ;;  %v1052_v11 = vmul.f32 %v2183_v1, %v2880_v25  ;;  %vm1057_vm11 = vweird.f32 %v2183_v1  ;;  %vm1061_vm15 = vcmp.eq.f32.partialorder %v1060_v22, 8.507059e+37  ;;  %v1029_v53 = vsel %vm2950_vm12, %v2873_v42, %v1025_v41 }
 0x2e0   : > { %v2921_v30 = vadd.f32 1.0, %v2185_v6  ;;  %v2187_v24 = vpop.eup %2186  ;;  %v1040_v4 = vadd.f32 %v2894_v21, %v1039_v3  ;;  %vm1058_vm10 = vmor %vm1056_vm14, %vm1057_vm11  ;;  %v2100_v25 = vpack.i.bf16 %v2944_v34, %v2940_v43  ;;  %vm1071_vm2 = vweird.f32 %v2897_v48  ;;  %v847_v6 = vpop.permute.xlu0 %846 }
 0x2e1   : > { %v1053_v39 = vsub.f32 1.0, %v1052_v11  ;;  %v2189_v20 = vpop.eup %2188  ;;  %v1067_v8 = vmul.f32 %v2187_v24, %v2897_v48  ;;  %vm1072_vm5 = vweird.f32 %v2187_v24  ;;  %v1048_v62 = vor.u32 1.1754944e-38, %v1047_v63 }
 0x2e2   : > { %2190 = vrcp.f32 %v2921_v30  ;;  %v2938_v32 = vadd.f32 1.0, %v2189_v20  ;;  %v1044_v2 = vsel %vm2960_vm0, %v2894_v21, %v1040_v4  ;;  %vm1073_vm1 = vmor %vm1071_vm2, %vm1072_vm5  ;;  %v1078_v13 = vor.u32 1.1754944e-38, %v1077_v50  ;;  %2101 = vrot.lane.b32.xlu2 %v2100_v25, %s2327_s25 }
 0x2e3   : > { %v1054_v44 = vmul.f32 %v2183_v1, %v1053_v39  ;;  %v1068_v46 = vsub.f32 1.0, %v1067_v8  ;;  %v1092_v42 = vand.u32 2147483648, %v2921_v30  ;;  %v1034_v48 = vsel %vm2924_vm6, %v1033_v7, %v1029_v53 }
 0x2e4   : > { %2192 = vrcp.f32 %v2938_v32  ;;  %v1049_v19 = vsel %vm2931_vm7, %v1048_v62, %v1044_v2  ;;  %v942_v3 = vadd.f32 %v2840_v28, %v2866_v15  ;;  %v1090_v7 = vand.u32 2147483647, %v2921_v30  ;;  %v1836_v2 = vld [vmem:[%s3218_s2 + $0x90] sm:$0xff]  ;;  %v1834_v62 = vld [vmem:[%s3218_s2 + $0x80] sm:$0xff] }
 0x2e5   : > { %v1055_v9 = vadd.f32 %v2183_v1, %v1054_v44  ;;  %v1069_v54 = vmul.f32 %v2187_v24, %v1068_v46  ;;  %v1113_v39 = vmul.f32 %v1034_v48, %v2870_v37  ;;  %vm1086_vm5 = vweird.f32 %v2921_v30 }
 0x2e6   : > { %v1114_v20 = vmul.f32 %v1049_v19, %v942_v3  ;;  %v1093_v28 = vor.u32 1.1754944e-38, %v1092_v42  ;;  %vm1091_vm11 = vcmp.eq.f32.partialorder %v1090_v7, 8.507059e+37  ;;  %vm1101_vm13 = vweird.f32 %v2938_v32 }
 0x2e7   : > { %v1059_v59 = vsel %vm1058_vm10, %v2183_v1, %v1055_v9  ;;  %v1070_v31 = vadd.f32 %v2187_v24, %v1069_v54  ;;  %vm1076_vm10 = vcmp.eq.f32.partialorder %v1075_v58, 8.507059e+37  ;;  %v1121_v37 = vadd.f32 %v1113_v39, %v2741_v56 }
 0x2e8   : > { %v2191_v61 = vpop.eup %2190  ;;  %v1064_v52 = vsel %vm1061_vm15, %v1063_v47, %v1059_v59  ;;  %v1122_v44 = vadd.f32 %v1114_v20, %v2743_v17  ;;  %v947_v10 = vadd.f32 %v2848_v36, %v847_v6  ;;  %vm3257_vm15 = vcmask 1039360  }
 0x2e9   : > { %v1082_v51 = vmul.f32 %v2191_v61, %v2921_v30  ;;  %v1115_v1 = vmul.f32 %v1064_v52, %v2876_v29  ;;  %v1074_v0 = vsel %vm1073_vm1, %v2187_v24, %v1070_v31  ;;  %v918_v29 = vadd.f32 %v2846_v33, %v847_v6  ;;  %v1839_v31 = vld [vmem:[%s3218_s2 + $0xa8] sm:$0xff]  ;;  %vm3258_vm2 = vmmov %vm3257_vm15 }
 0x2ea   : > { %v2193_v5 = vpop.eup %2192  ;;  %v1079_v21 = vsel %vm1076_vm10, %v1078_v13, %v1074_v0  ;;  %vm1087_vm0 = vweird.f32 %v2191_v61  ;;  %v1107_v33 = vand.u32 2147483648, %v2938_v32  ;;  %v3005_v47 = vmul.f32 0.70710677, %v1121_v37  ;;  %v1840_v13 = vld [vmem:[%s3218_s2 + $0xb0] sm:$0xff]  ;;  %vm3259_vm1 = vmmov %vm3258_vm2 }
 0x2eb   : > { %v1083_v11 = vsub.f32 1.0, %v1082_v51  ;;  %v1123_v14 = vadd.f32 %v1115_v1, %v2724_v55  ;;  %v1097_v63 = vmul.f32 %v2193_v5, %v2938_v32  ;;  %v1116_v24 = vmul.f32 %v1079_v21, %v2902_v40  ;;  %vm1088_vm6 = vmor %vm1086_vm5, %vm1087_vm0  ;;  %v1837_v51 = vld [vmem:[%s3218_s2 + $0x98] sm:$0xff]  ;;  %v1835_v1 = vld [vmem:[%s3218_s2 + $0x88] sm:$0xff] }
 0x2ec   : > { %vm1102_vm7 = vweird.f32 %v2193_v5  ;;  %v1105_v40 = vand.u32 2147483647, %v2938_v32  ;;  %v1108_v4 = vor.u32 1.1754944e-38, %v1107_v33  ;;  %v3007_v54 = vmul.f32 0.70710677, %v1122_v44  ;;  %vm3260_vm10 = vmmov %vm3259_vm1 }
 0x2ed   : > { %v1084_v38 = vmul.f32 %v2191_v61, %v1083_v11  ;;  %v1098_v22 = vsub.f32 1.0, %v1097_v63  ;;  %v1124_v55 = vadd.f32 %v1116_v24, %v2732_v35  ;;  %v2990_v12 = vmul.f32 0.70710677, %v1123_v14  ;;  %vm1103_vm12 = vmor %vm1101_vm13, %vm1102_vm7 }
 0x2ee   : > { %vm1106_vm14 = vcmp.eq.f32.partialorder %v1105_v40, 8.507059e+37  ;;  %v2105_v25 = vpack.i.bf16 %v3007_v54, %v3005_v47  ;;  %v2120_v59 = vpack.i.bf16 %v3007_v54, %v2944_v34  ;;  %v2125_v52 = vpack.i.bf16 %v3005_v47, %v2940_v43  ;;  %vm3261_vm0 = vmmov %vm3259_vm1 }
 0x2ef   : > { %v1085_v41 = vadd.f32 %v2191_v61, %v1084_v38  ;;  %v1099_v15 = vmul.f32 %v2193_v5, %v1098_v22  ;;  %v2995_v57 = vmul.f32 0.70710677, %v1124_v55  ;;  %vm3262_vm5 = vmmov %vm3261_vm0  ;;  %v1235_v45 = vpack.c.bf16 %v3005_v47, %v2940_v43 }
 0x2f0   : > { %vm3264_vm7 = vmmov %vm3261_vm0  ;;  %v1236_v49 = vpack.c.bf16 %v3007_v54, %v2944_v34 }
 0x2f1   : > { %v1089_v35 = vsel %vm1088_vm6, %v2191_v61, %v1085_v41  ;;  %v1100_v26 = vadd.f32 %v2193_v5, %v1099_v15  ;;  %v2090_v30 = vpack.i.bf16 %v2995_v57, %v2990_v12  ;;  %v1841_v61 = vld [vmem:[%s3218_s2 + $0xb8] sm:$0xff]  ;;  %vm3263_vm6 = vmmov %vm3261_vm0 }
 0x2f2   : > { %v1094_v8 = vsel %vm1091_vm11, %v1093_v28, %v1089_v35 }
 0x2f3   : > { %v1117_v46 = vmul.f32 %v1094_v8, %v918_v29  ;;  %2091 = vrot.lane.b32.xlu0 %v2090_v30, %s2327_s25  ;;  %v1104_v9 = vsel %vm1103_vm12, %v2193_v5, %v1100_v26 }
 0x2f4   : > { %v1109_v32 = vsel %vm1106_vm14, %v1108_v4, %v1104_v9 }
 0x2f5   : > { %v1125_v50 = vadd.f32 %v1117_v46, %v2745_v18  ;;  %v1118_v56 = vmul.f32 %v1109_v32, %v947_v10 }
 0x2f7   : > { %v3009_v58 = vmul.f32 0.70710677, %v1125_v50  ;;  %v1126_v17 = vadd.f32 %v1118_v56, %v2748_v60  ;;  %v1838_v60 = vld [vmem:[%s3218_s2 + $0xa0] sm:$0xff] }
 0x2f9   : > { %v2115_v16 = vpack.i.bf16 %v3009_v58, %v2990_v12  ;;  %v3014_v36 = vmul.f32 0.70710677, %v1126_v17  ;;  %v1237_v8 = vpack.c.bf16 %v3009_v58, %v2990_v12 }
 0x2fb   : > { %2116 = vrot.lane.b32.xlu2 %v2115_v16, %s2328_s26  ;;  %v2095_v18 = vpack.i.bf16 %v3014_v36, %v3009_v58  ;;  %2106 = vrot.lane.b32.xlu0 %v2105_v25, %s2327_s25  ;;  %v2110_v53 = vpack.i.bf16 %v3014_v36, %v2995_v57  ;;  %v1238_v44 = vpack.c.bf16 %v3014_v36, %v2995_v57 }
 0x2fd   : > { %2096 = vrot.lane.b32.xlu1 %v2095_v18, %s2327_s25  ;;  %s1590_s25 = sshll.u32 %s1587_s7, 4  ;;  %s1591_s25 = int_to_ptr.hbm [resolvable:$true] %s1590_s25 }
 0x2fe   : > { %s2270_s9 = sshra.s32 %s1591_s25, 4  ;;  %s2271_s9 = int_to_ptr.hbm [resolvable:$true] %s2270_s9 }
 0x2ff   : > { %s2272_s10 = scalar_lea.hbm %s2271_s9, 64  ;;  %p2277_p5 = scmp.lt.s32.totalorder %s2271_s9, %s3219_s3 }
 0x300   : > { %p2273_p2 = scmp.ne.s32.totalorder %s2271_s9, %s2272_s10  ;;  %p2278_p7 = scmp.lt.s32.totalorder %s2276_s22, %s2272_s10 }
 0x302   : > { %p2274_p3 = pnand %p2273_p2, %p2396_p6  ;;  %p2279_p8 = por %p2278_p7, %p2277_p5 }
 0x303   : > { %1283 = vperm.xlu2 %2047, %v1838_v60   ;;  %2121 = vrot.lane.b32.xlu0 %v2120_v59, %s2328_s26 }
 0x304   : > { %p2275_p4 = pneg %p2274_p3 }
 0x305   : > { %2111 = vrot.lane.b32.xlu1 %v2110_v53, %s2328_s26 }
 0x306   : > { %p2280_p9 = pnand %p2279_p8, %p2275_p4 }
 0x30b   : > { %1298 = vperm.xlu2 %2047, %v1841_v61   ;;  %1288 = vperm.xlu0 %2048, %v1839_v31  }
 0x30d   : > { %2126 = vrot.lane.b32.xlu1 %v2125_v52, %s2328_s26 }
 0x313   : > { %1273 = vperm.xlu2 %2047, %v1836_v2   ;;  %1263 = vperm.xlu0 %2048, %v1834_v62  }
 0x315   : > { %1293 = vperm.xlu1 %2049, %v1840_v13  }
 0x31b   : > { %1278 = vperm.xlu0 %2048, %v1837_v51   ;;  %v1928_v51 = vld [vmem:[#allocation3 + $0x40] sm:$0xff] }
 0x31d   : > { %1268 = vperm.xlu1 %2049, %v1835_v1   ;;  %v1929_v1 = vld [vmem:[#allocation3 + $0x48] sm:$0xff] }
 0x33c   : > { %v2102_v48 = vpop.permute.xlu2 %2101 }
 0x33d   : > { %v2104_v29 = vunpack.i.h.bf16 %v2102_v48  ;;  %v2103_v63 = vunpack.i.l.bf16 %v2102_v48 }
 0x33f   : > { %v1203_v28 = vsel %vm3263_vm6, %v2103_v63, %v2104_v29  ;;  %v1219_v33 = vsel %vm3264_vm7, %v2104_v29, %v2103_v63 }
 0x355   : > { %v2117_v37 = vpop.permute.xlu2 %2116 }
 0x356   : > { %v2119_v4 = vunpack.i.h.bf16 %v2117_v37  ;;  %v2118_v46 = vunpack.i.l.bf16 %v2117_v37 }
 0x365   : > { %v2092_v42 = vpop.permute.xlu0 %2091 }
 0x366   : > { %v2094_v5 = vunpack.i.h.bf16 %v2092_v42  ;;  %v2093_v6 = vunpack.i.l.bf16 %v2092_v42  ;;  %v1930_v42 = vld [vmem:[#allocation3 + $0x50] sm:$0xff] }
 0x368   : > { %v1205_v24 = vsel %vm3257_vm15, %v2093_v6, %v2094_v5  ;;  %v1221_v7 = vsel %vm3259_vm1, %v2094_v5, %v2093_v6  ;;  %vm3273_vm1 = vcmask 785408  }
 0x36d   : > { %v2107_v0 = vpop.permute.xlu0 %2106 }
 0x36e   : > { %v2109_v19 = vunpack.i.h.bf16 %v2107_v0  ;;  %v2108_v3 = vunpack.i.l.bf16 %v2107_v0  ;;  %v1931_v0 = vld [vmem:[#allocation3 + $0x58] sm:$0xff] }
 0x36f   : > { %v2097_v11 = vpop.permute.xlu1 %2096 }
 0x370   : > { %v2099_v21 = vunpack.i.h.bf16 %v2097_v11  ;;  %v2098_v14 = vunpack.i.l.bf16 %v2097_v11  ;;  %v1204_v20 = vsel %vm3261_vm0, %v2108_v3, %v2109_v19  ;;  %v1220_v41 = vsel %vm3262_vm5, %v2109_v19, %v2108_v3  ;;  %vm3275_vm0 = vmmov %vm3273_vm1  ;;  %v1284_v19 = vpop.permute.xlu2 %1283 }
 0x371   : > { %v1866_v40 = vpack.c.bf16 %v1204_v20, %v1203_v28  ;;  %v1890_v35 = vpack.c.bf16 %v1220_v41, %v1219_v33  ;;  %vm3276_vm5 = vmmov %vm3275_vm0 }
 0x372   : > { %v1206_v38 = vsel %vm3258_vm2, %v2098_v14, %v2099_v21  ;;  %v1222_v39 = vsel %vm3260_vm10, %v2099_v21, %v2098_v14  ;;  %vm3274_vm10 = vmmov %vm3273_vm1 }
 0x373   : > { %v1861_v22 = vpack.c.bf16 %v1206_v38, %v1205_v24  ;;  %v1885_v55 = vpack.c.bf16 %v1222_v39, %v1221_v7  ;;  %vm3277_vm6 = vmmov %vm3275_vm0 }
 0x374   : > { %vm3278_vm7 = vmmov %vm3275_vm0 }
 0x375   : > { %1862 = vmatpush.bf16.msk.msrb.mxu0 %vm2495_vm3, %v1861_v22  ;;  %1886 = vmatpush.bf16.msk.msrb.mxu1 %vm2501_vm4, %v1885_v55  ;;  %v2122_v10 = vpop.permute.xlu0 %2121 }
 0x376   : > { %v2124_v18 = vunpack.i.h.bf16 %v2122_v10  ;;  %v2123_v60 = vunpack.i.l.bf16 %v2122_v10 }
 0x377   : > { %v2112_v15 = vpop.permute.xlu1 %2111 }
 0x378   : > { %v2114_v26 = vunpack.i.h.bf16 %v2112_v15  ;;  %v2113_v30 = vunpack.i.l.bf16 %v2112_v15 }
 0x379   : > { %1867 = vmatpush.bf16.msk.msrb.mxu0 %vm2495_vm3, %v1866_v40  ;;  %1891 = vmatpush.bf16.msk.msrb.mxu1 %vm2501_vm4, %v1890_v35  ;;  %vm3265_vm3 = vcmask 7168  }
 0x37a   : > { %v1177_v32 = vsel %vm3265_vm3, %v2113_v30, %v2118_v46  ;;  %vm3266_vm4 = vmmov %vm3265_vm3 }
 0x37b   : > { %v1178_v50 = vsel %vm3266_vm4, %v2114_v26, %v2119_v4  ;;  %vm3267_vm11 = vmmov %vm3265_vm3 }
 0x37c   : > { %v1165_v16 = vsel %vm3267_vm11, %v2118_v46, %v2113_v30  ;;  %vm3268_vm13 = vmmov %vm3265_vm3  ;;  %v1871_v59 = vpack.c.bf16 %v1178_v50, %v1177_v32 }
 0x37d   : > { %1337 = vmatpush.bf16.msrb.mxu0 %v1237_v8  ;;  %1366 = vmatpush.bf16.msrb.mxu1 %v1238_v44  ;;  %v1166_v25 = vsel %vm3268_vm13, %v2119_v4, %v2114_v26  ;;  %vm3269_vm12 = vmmov %vm3265_vm3  ;;  %v1289_v39 = vpop.permute.xlu0 %1288 }
 0x37e   : > { %v1895_v53 = vpack.c.bf16 %v1166_v25, %v1165_v16  ;;  %vm3270_vm14 = vmmov %vm3265_vm3 }
 0x37f   : > { %v2127_v9 = vpop.permute.xlu1 %2126  ;;  %vm3271_vm15 = vmmov %vm3265_vm3 }
 0x380   : > { %v2129_v56 = vunpack.i.h.bf16 %v2127_v9  ;;  %v2128_v17 = vunpack.i.l.bf16 %v2127_v9  ;;  %vm3272_vm2 = vmmov %vm3265_vm3 }
 0x381   : > { %1338 = vmatpush.bf16.msrb.mxu0 %v1235_v45  ;;  %1367 = vmatpush.bf16.msrb.mxu1 %v1236_v49  ;;  %vm3279_vm3 = vmmov %vm3275_vm0 }
 0x382   : > { %v1175_v61 = vsel %vm3269_vm12, %v2123_v60, %v2128_v17  ;;  %v1176_v31 = vsel %vm3270_vm14, %v2124_v18, %v2129_v56  ;;  %v1163_v52 = vsel %vm3271_vm15, %v2128_v17, %v2123_v60  ;;  %v1164_v2 = vsel %vm3272_vm2, %v2129_v56, %v2124_v18 }
 0x383   : > { %v1876_v62 = vpack.c.bf16 %v1176_v31, %v1175_v61  ;;  %v1900_v13 = vpack.c.bf16 %v1164_v2, %v1163_v52 }
 0x385   : > { %1872 = vmatpush.bf16.msk.msrb.mxu0 %vm2552_vm8, %v1871_v59  ;;  %1896 = vmatpush.bf16.msk.msrb.mxu1 %vm2558_vm9, %v1895_v53  ;;  %v1264_v50 = vpop.permute.xlu0 %1263 }
 0x387   : > { %v1294_v40 = vpop.permute.xlu1 %1293 }
 0x389   : > { %1877 = vmatpush.bf16.msk.msrb.mxu0 %vm2552_vm8, %v1876_v62  ;;  %1901 = vmatpush.bf16.msk.msrb.mxu1 %vm2558_vm9, %v1900_v13  ;;  %vm3280_vm8 = vmmov %vm3275_vm0 }
 0x38c   : > { %1878 = vmatmul.msk.bf16.vlgmr.msrb.gmra.mxu0 %vm3273_vm1, %v1928_v51  ;;  %1902 = vmatmul.msk.bf16.vlgmr.msrb.gmra.mxu1 %vm3274_vm10, %v1928_v51 }
 0x38f   : > { %v1269_v16 = vpop.permute.xlu1 %1268 }
 0x39c   : > { %1879 = vmatmul.msk.bf16.gmra.mxu0 %vm3275_vm0, %v1929_v1  ;;  %1903 = vmatmul.msk.bf16.gmra.mxu1 %vm3276_vm5, %v1929_v1 }
 0x3ac   : > { %1880 = vmatmul.msk.bf16.gmra.mxu0 %vm3277_vm6, %v1930_v42  ;;  %1904 = vmatmul.msk.bf16.gmra.mxu1 %vm3278_vm7, %v1930_v42  ;;  %v1299_v42 = vpop.permute.xlu2 %1298 }
 0x3bc   : > { %1881 = vmatmul.msk.bf16.gmra.mxu0 %vm3279_vm3, %v1931_v0  ;;  %1905 = vmatmul.msk.bf16.gmra.mxu1 %vm3280_vm8, %v1931_v0 }
 0x409   : > { %v1342_v23 = vpop.f32.mrf.mxu0  ;;  %v1371_v27 = vpop.f32.mrf.mxu1 }
 0x40a   : > { %v1343_v25 = vadd.f32 %v1342_v23, %v1264_v50  ;;  %v1372_v18 = vadd.f32 %v1371_v27, %v1264_v50 }
 0x411   : > { %v1344_v48 = vpop.f32.mrf.mxu0  ;;  %v3104_v5 = vpop.f32.mrf.mxu1 }
 0x412   : > { %v3117_v59 = vadd.f32 %v1344_v48, %v1269_v16  ;;  %v3123_v0 = vadd.f32 %v3104_v5, %v1269_v16 }
 0x419   : > { %v3106_v6 = vpop.f32.mrf.mxu0  ;;  %v3108_v11 = vpop.f32.mrf.mxu1 }
 0x421   : > { %v3110_v21 = vpop.f32.mrf.mxu0  ;;  %v3112_v14 = vpop.f32.mrf.mxu1 }
 0x429   : > { %v1352_v3 = vpop.f32.mrf.mxu0  ;;  %v1381_v29 = vpop.f32.mrf.mxu1 }
 0x42a   : > { %v1353_v63 = vadd.f32 %v1352_v3, %v1284_v19  ;;  %v1382_v24 = vadd.f32 %v1381_v29, %v1284_v19 }
 0x42c   : > { %v1906_v38 = vmul.f32 -1.442695, %v1353_v63  ;;  %v1907_v7 = vmul.f32 -1.442695, %v1382_v24 }
 0x42e   : > { %2194 = vpow2.f32 %v1906_v38 }
 0x42f   : > { %2196 = vpow2.f32 %v1907_v7 }
 0x431   : > { %v1354_v22 = vpop.f32.mrf.mxu0  ;;  %v1383_v55 = vpop.f32.mrf.mxu1 }
 0x432   : > { %v1355_v20 = vadd.f32 %v1354_v22, %v1289_v39  ;;  %v1384_v41 = vadd.f32 %v1383_v55, %v1289_v39 }
 0x434   : > { %v2195_v28 = vpop.eup %2194  ;;  %v1908_v33 = vmul.f32 -1.442695, %v1355_v20  ;;  %v1909_v37 = vmul.f32 -1.442695, %v1384_v41 }
 0x435   : > { %v2197_v15 = vpop.eup %2196  ;;  %v1415_v35 = vadd.f32 1.0, %v2195_v28 }
 0x436   : > { %v1416_v26 = vadd.f32 1.0, %v2197_v15  ;;  %2198 = vpow2.f32 %v1908_v33 }
 0x437   : > { %2200 = vrcp.f32 %v1415_v35  ;;  %v1432_v61 = vand.u32 2147483647, %v1415_v35  ;;  %v1434_v52 = vand.u32 2147483648, %v1415_v35  ;;  %vm1428_vm4 = vweird.f32 %v1415_v35 }
 0x438   : > { %2202 = vrcp.f32 %v1416_v26  ;;  %v1447_v62 = vand.u32 2147483647, %v1416_v26  ;;  %v1449_v1 = vand.u32 2147483648, %v1416_v26  ;;  %vm1443_vm12 = vweird.f32 %v1416_v26 }
 0x439   : > { %2204 = vpow2.f32 %v1909_v37  ;;  %v1357_v30 = vpop.f32.mrf.mxu0  ;;  %v1386_v8 = vpop.f32.mrf.mxu1  ;;  %vm3125_vm13 = vcmp.eq.f32.partialorder %v1432_v61, 8.507059e+37  ;;  %v1435_v63 = vor.u32 1.1754944e-38, %v1434_v52 }
 0x43a   : > { %v1358_v44 = vadd.f32 %v1357_v30, %v1294_v40  ;;  %v1387_v4 = vadd.f32 %v1386_v8, %v1294_v40  ;;  %vm1448_vm15 = vcmp.eq.f32.partialorder %v1447_v62, 8.507059e+37  ;;  %v1450_v7 = vor.u32 1.1754944e-38, %v1449_v1 }
 0x43c   : > { %v2199_v46 = vpop.eup %2198  ;;  %v1910_v10 = vmul.f32 -1.442695, %v1358_v44  ;;  %v1911_v49 = vmul.f32 -1.442695, %v1387_v4 }
 0x43d   : > { %v2201_v9 = vpop.eup %2200  ;;  %v3114_v45 = vadd.f32 1.0, %v2199_v46 }
 0x43e   : > { %v2203_v32 = vpop.eup %2202  ;;  %v1424_v56 = vmul.f32 %v2201_v9, %v1415_v35  ;;  %2206 = vpow2.f32 %v1910_v10  ;;  %vm1429_vm9 = vweird.f32 %v2201_v9 }
 0x43f   : > { %v2205_v17 = vpop.eup %2204  ;;  %v1439_v60 = vmul.f32 %v2203_v32, %v1416_v26  ;;  %2208 = vrcp.f32 %v3114_v45  ;;  %vm1444_vm11 = vweird.f32 %v2203_v32  ;;  %vm1430_vm14 = vmor %vm1428_vm4, %vm1429_vm9  ;;  %vm1458_vm1 = vweird.f32 %v3114_v45 }
 0x440   : > { %v1425_v53 = vsub.f32 1.0, %v1424_v56  ;;  %v3119_v31 = vadd.f32 1.0, %v2205_v17  ;;  %2210 = vpow2.f32 %v1911_v49  ;;  %vm1445_vm2 = vmor %vm1443_vm12, %vm1444_vm11  ;;  %v1462_v37 = vand.u32 2147483647, %v3114_v45 }
 0x441   : > { %v1440_v2 = vsub.f32 1.0, %v1439_v60  ;;  %v1359_v13 = vpop.f32.mrf.mxu0  ;;  %v1388_v22 = vpop.f32.mrf.mxu1  ;;  %v1464_v30 = vand.u32 2147483648, %v3114_v45 }
 0x442   : > { %v1426_v51 = vmul.f32 %v2201_v9, %v1425_v53  ;;  %2212 = vrcp.f32 %v3119_v31  ;;  %v1360_v3 = vadd.f32 %v1359_v13, %v1299_v42  ;;  %v1389_v44 = vadd.f32 %v1388_v22, %v1299_v42 }
 0x443   : > { %v1441_v23 = vmul.f32 %v2203_v32, %v1440_v2  ;;  %v1479_v17 = vand.u32 2147483648, %v3119_v31  ;;  %vm1463_vm6 = vcmp.eq.f32.partialorder %v1462_v37, 8.507059e+37  ;;  %vm1473_vm7 = vweird.f32 %v3119_v31 }
 0x444   : > { %v2207_v27 = vpop.eup %2206  ;;  %v1427_v48 = vadd.f32 %v2201_v9, %v1426_v51  ;;  %v1912_v28 = vmul.f32 -1.442695, %v1360_v3  ;;  %v1913_v53 = vmul.f32 -1.442695, %v1389_v44 }
 0x445   : > { %v2209_v29 = vpop.eup %2208  ;;  %v1442_v24 = vadd.f32 %v2203_v32, %v1441_v23  ;;  %v3129_v38 = vadd.f32 1.0, %v2207_v27  ;;  %v1480_v2 = vor.u32 1.1754944e-38, %v1479_v17  ;;  %v1279_v17 = vpop.permute.xlu0 %1278 }
 0x446   : > { %v1431_v5 = vsel %vm1430_vm14, %v2201_v9, %v1427_v48  ;;  %v1454_v39 = vmul.f32 %v2209_v29, %v3114_v45  ;;  %v2211_v55 = vpop.eup %2210  ;;  %vm1459_vm10 = vweird.f32 %v2209_v29 }
 0x447   : > { %v1436_v20 = vsel %vm3125_vm13, %v1435_v63, %v1431_v5  ;;  %v1446_v41 = vsel %vm1445_vm2, %v2203_v32, %v1442_v24  ;;  %2214 = vrcp.f32 %v3129_v38  ;;  %v3140_v10 = vadd.f32 1.0, %v2211_v55  ;;  %vm1460_vm0 = vmor %vm1458_vm1, %vm1459_vm10 }
 0x448   : > { %v2213_v33 = vpop.eup %2212  ;;  %v1543_v15 = vmul.f32 %v1436_v20, %v1343_v25  ;;  %v1451_v40 = vsel %vm1448_vm15, %v1450_v7, %v1446_v41  ;;  %v1455_v35 = vsub.f32 1.0, %v1454_v39  ;;  %v1477_v32 = vand.u32 2147483647, %v3119_v31 }
 0x449   : > { %v1544_v26 = vmul.f32 %v1451_v40, %v1372_v18  ;;  %v1469_v8 = vmul.f32 %v2213_v33, %v3119_v31  ;;  %2216 = vpow2.f32 %v1912_v28  ;;  %vm1474_vm5 = vweird.f32 %v2213_v33 }
 0x44a   : > { %v1551_v4 = vadd.f32 %v1543_v15, %v2940_v43  ;;  %v1456_v46 = vmul.f32 %v2209_v29, %v1455_v35  ;;  %2218 = vrcp.f32 %v3140_v10  ;;  %v1465_v43 = vor.u32 1.1754944e-38, %v1464_v30  ;;  %vm1475_vm8 = vmor %vm1473_vm7, %vm1474_vm5 }
 0x44b   : > { %v1552_v9 = vadd.f32 %v1544_v26, %v2944_v34  ;;  %v1470_v49 = vsub.f32 1.0, %v1469_v8  ;;  %vm1478_vm3 = vcmp.eq.f32.partialorder %v1477_v32, 8.507059e+37  ;;  %2220 = vpow2.f32 %v1913_v53 }
 0x44c   : > { %v1559_v50 = vmul.f32 0.70710677, %v1551_v4  ;;  %v1457_v56 = vadd.f32 %v2209_v29, %v1456_v46  ;;  %v1492_v1 = vand.u32 2147483647, %v3129_v38  ;;  %v1494_v42 = vand.u32 2147483648, %v3129_v38 }
 0x44d   : > { %v2215_v16 = vpop.eup %2214  ;;  %v1560_v25 = vmul.f32 0.70710677, %v1552_v9  ;;  %v1471_v18 = vmul.f32 %v2213_v33, %v1470_v49  ;;  %vm1488_vm4 = vweird.f32 %v3129_v38  ;;  %v1507_v55 = vand.u32 2147483647, %v3140_v10 }
 0x44e   : > { %1567 = vst [vmem:[%s3149_s4] sm:$0xff] %v1559_v50  ;;  %v1461_v34 = vsel %vm1460_vm0, %v2209_v29, %v1457_v56  ;;  %v1484_v60 = vmul.f32 %v2215_v16, %v3129_v38  ;;  %vm1489_vm9 = vweird.f32 %v2215_v16  ;;  %v1274_v29 = vpop.permute.xlu2 %1273  ;;  %vm1493_vm13 = vcmp.eq.f32.partialorder %v1492_v1, 8.507059e+37 }
 0x44f   : > { %1568 = vst [vmem:[%s3149_s4 + $0x8] sm:$0xff] %v1560_v25  ;;  %v1466_v61 = vsel %vm1463_vm6, %v1465_v43, %v1461_v34  ;;  %v1472_v52 = vadd.f32 %v2213_v33, %v1471_v18  ;;  %v2217_v13 = vpop.eup %2216  ;;  %v1348_v5 = vadd.f32 %v3106_v6, %v1274_v29  ;;  %vm1490_vm11 = vmor %vm1488_vm4, %vm1489_vm9  ;;  %v1509_v20 = vand.u32 2147483648, %v3140_v10 }
 0x450   : > { %v1545_v45 = vmul.f32 %v1466_v61, %v3117_v59  ;;  %v1485_v62 = vsub.f32 1.0, %v1484_v60  ;;  %v2219_v23 = vpop.eup %2218  ;;  %v1421_v19 = vadd.f32 1.0, %v2217_v13  ;;  %vm1503_vm14 = vweird.f32 %v3140_v10 }
 0x451   : > { %v1476_v51 = vsel %vm1475_vm8, %v2213_v33, %v1472_v52  ;;  %v1499_v3 = vmul.f32 %v2219_v23, %v3140_v10  ;;  %v2221_v22 = vpop.eup %2220  ;;  %vm1504_vm12 = vweird.f32 %v2219_v23  ;;  %v1510_v35 = vor.u32 1.1754944e-38, %v1509_v20 }
 0x452   : > { %v1553_v27 = vadd.f32 %v1545_v45, %v3005_v47  ;;  %v1481_v48 = vsel %vm1478_vm3, %v1480_v2, %v1476_v51  ;;  %v1486_v31 = vmul.f32 %v2215_v16, %v1485_v62  ;;  %2222 = vrcp.f32 %v1421_v19  ;;  %vm1505_vm15 = vmor %vm1503_vm14, %vm1504_vm12 }
 0x453   : > { %v1546_v59 = vmul.f32 %v1481_v48, %v3123_v0  ;;  %v1495_v47 = vor.u32 1.1754944e-38, %v1494_v42  ;;  %v1500_v39 = vsub.f32 1.0, %v1499_v3  ;;  %v1422_v33 = vadd.f32 1.0, %v2221_v22 }
 0x454   : > { %v1561_v63 = vmul.f32 0.70710677, %v1553_v27  ;;  %v1487_v24 = vadd.f32 %v2215_v16, %v1486_v31  ;;  %v1377_v37 = vadd.f32 %v3108_v11, %v1274_v29  ;;  %vm1508_vm2 = vcmp.eq.f32.partialorder %v1507_v55, 8.507059e+37 }
 0x455   : > { %v1554_v7 = vadd.f32 %v1546_v59, %v3007_v54  ;;  %v1501_v28 = vmul.f32 %v2219_v23, %v1500_v39  ;;  %2224 = vrcp.f32 %v1422_v33  ;;  %v1524_v9 = vand.u32 2147483648, %v1421_v19 }
 0x456   : > { %1569 = vst [vmem:[%s3149_s4 + $0x10] sm:$0xff] %v1561_v63  ;;  %v1491_v0 = vsel %vm1490_vm11, %v2215_v16, %v1487_v24  ;;  %vm1518_vm10 = vweird.f32 %v1421_v19  ;;  %v1350_v25 = vadd.f32 %v3110_v21, %v1279_v17  ;;  %v1537_v61 = vand.u32 2147483647, %v1422_v33 }
 0x457   : > { %v1562_v41 = vmul.f32 0.70710677, %v1554_v7  ;;  %v1496_v38 = vsel %vm1493_vm13, %v1495_v47, %v1491_v0  ;;  %v1502_v54 = vadd.f32 %v2219_v23, %v1501_v28  ;;  %v1525_v16 = vor.u32 1.1754944e-38, %v1524_v9 }
 0x458   : > { %v1547_v6 = vmul.f32 %v1496_v38, %v1348_v5  ;;  %v2223_v15 = vpop.eup %2222  ;;  %vm1533_vm7 = vweird.f32 %v1422_v33  ;;  %v1379_v2 = vadd.f32 %v3112_v14, %v1279_v17  ;;  %vm1538_vm8 = vcmp.eq.f32.partialorder %v1537_v61, 8.507059e+37 }
 0x459   : > { %1570 = vst [vmem:[%s3149_s4 + $0x18] sm:$0xff] %v1562_v41  ;;  %v1506_v26 = vsel %vm1505_vm15, %v2219_v23, %v1502_v54  ;;  %v1514_v30 = vmul.f32 %v2223_v15, %v1421_v19  ;;  %vm1519_vm1 = vweird.f32 %v2223_v15 }
 0x45a   : > { %v1555_v40 = vadd.f32 %v1547_v6, %v2990_v12  ;;  %v1511_v44 = vsel %vm1508_vm2, %v1510_v35, %v1506_v26  ;;  %v1522_v12 = vand.u32 2147483647, %v1421_v19  ;;  %vm1520_vm0 = vmor %vm1518_vm10, %vm1519_vm1 }
 0x45b   : > { %v1548_v4 = vmul.f32 %v1511_v44, %v1377_v37  ;;  %v1515_v46 = vsub.f32 1.0, %v1514_v30  ;;  %v2225_v32 = vpop.eup %2224 }
 0x45c   : > { %v1563_v8 = vmul.f32 0.70710677, %v1555_v40  ;;  %v1529_v11 = vmul.f32 %v2225_v32, %v1422_v33  ;;  %vm1523_vm5 = vcmp.eq.f32.partialorder %v1522_v12, 8.507059e+37  ;;  %vm1534_vm6 = vweird.f32 %v2225_v32 }
 0x45d   : > { %v1556_v10 = vadd.f32 %v1548_v4, %v2995_v57  ;;  %v1516_v49 = vmul.f32 %v2223_v15, %v1515_v46  ;;  %v1539_v57 = vand.u32 2147483648, %v1422_v33  ;;  %vm1535_vm3 = vmor %vm1533_vm7, %vm1534_vm6 }
 0x45e   : > { %1571 = vst [vmem:[%s3149_s4 + $0x20] sm:$0xff] %v1563_v8  ;;  %v1530_v18 = vsub.f32 1.0, %v1529_v11 }
 0x45f   : > { %v1564_v50 = vmul.f32 0.70710677, %v1556_v10  ;;  %v1517_v56 = vadd.f32 %v2223_v15, %v1516_v49  ;;  %v1540_v21 = vor.u32 1.1754944e-38, %v1539_v57 }
 0x460   : > { %v1531_v53 = vmul.f32 %v2225_v32, %v1530_v18 }
 0x461   : > { %1572 = vst [vmem:[%s3149_s4 + $0x28] sm:$0xff] %v1564_v50  ;;  %v1521_v43 = vsel %vm1520_vm0, %v2223_v15, %v1517_v56 }
 0x462   : > { %v1526_v34 = vsel %vm1523_vm5, %v1525_v16, %v1521_v43  ;;  %v1532_v45 = vadd.f32 %v2225_v32, %v1531_v53 }
 0x463   : > { %v1549_v60 = vmul.f32 %v1526_v34, %v1350_v25 }
 0x464   : > { %v1536_v13 = vsel %vm1535_vm3, %v2225_v32, %v1532_v45 }
 0x465   : > { %v1557_v52 = vadd.f32 %v1549_v60, %v3009_v58  ;;  %v1541_v51 = vsel %vm1538_vm8, %v1540_v21, %v1536_v13 }
 0x466   : > { %v1550_v58 = vmul.f32 %v1541_v51, %v1379_v2 }
 0x467   : > { %v1565_v62 = vmul.f32 0.70710677, %v1557_v52 }
 0x468   : > { %v1558_v1 = vadd.f32 %v1550_v58, %v3014_v36 }
 0x469   : > { %1573 = vst [vmem:[%s3149_s4 + $0x30] sm:$0xff] %v1565_v62 }
 0x46a   : > { %v1566_v42 = vmul.f32 0.70710677, %v1558_v1 }
 0x46c   : > { %1574 = vst [vmem:[%s3149_s4 + $0x38] sm:$0xff] %v1566_v42 }
 0x46d   : > { %2283 = shalt.err (!%p2280_p9)
}
 0x46e   : > { %s2330_s19 = smov 256   ;;  %s2331_s29 = smov 512  }
 0x46f   : > { %s2332_s26 = smov 16  }
 0x470   : > { %1953 = dma.vmem_to_hbm [thread:$0]  (%p2396_p6), %s1589_s16, 1024, %s1591_s25, %s1576_s8, %s2330_s19, %s2331_s29, %s2332_s26  }
 0x471 PF: > { %s1605_s30 = sand.u32 1, %s2310_s12   ;;  %p1960_p11 = pnand %p1674_p1, %p2402_p10 }
 0x472   : > { %s1606_s4 = scalar_lea.sflag [#allocation5], %s1605_s30 }
 0x473   : > { %p1961_p12 = pneg %p1960_p11 }
 0x475   : > { %2305 = dma.done.wait (%p1961_p12), %s1606_s4, 1024  }
 0x476   : > { %2307 = vsyncadd (%p1961_p12), %s1606_s4, 4294966272  ;;  %p14_p13 = scmp.ge.s32.totalorder %s2378_s18, 4   ;;  %s3283_s12 = smov %s2314_s13 }
 0x477   : > { %s3284_s13 = smov %s2318_s14  ;;  %s3285_s14 = smov %s2390_s21 }
 0x478   : > { %s3286_s15 = smov %s2378_s18  ;;  %16 = sbr.rel (!%p14_p13) target bundleno = 4 (0x4), region = 104 }
 0x47d   :  { %1612 = vsyncpa [#allocation4], 1 }
 0x47e   :  { %1614 = vsyncpa [#allocation4 + $0x1], 1 }
 0x47f   :  { %1615 = vsyncpa [#allocation5], 1 }
 0x480   :  { %1617 = vsyncpa [#allocation5 + $0x1], 1 }

</bundles_post_ra>
